<compile_context>
chip_gen: v7x
topology: tpu7x:2x2x1
jax: 0.10.0
libtpu: 0.0.40
codegen_flags: <defaults>
</compile_context>

<pallas_src>
import jax
import jax.numpy as jnp
import numpy as np
from jax.experimental import pallas as pl
from jax.experimental.pallas import tpu as pltpu


def _round_up(x, m):
    return ((x + m - 1) // m) * m


# ----------------------------- Pallas kernel --------------------------------
def plainnet_kernel(x_ref,
                    w1_ref, sh1_ref,
                    w2_ref, sh2_ref,
                    w3_ref, sh3_ref,
                    o_ref):
    """Fused 3x (1x1 conv + BN(eval) + ReLU) in channel-major (C, HW) layout.

    Per spatial tile of T pixels:
      h1 = relu(W1 @ x  + s1)   -- K = C_in (tiny): VPU broadcast-FMAs, exact f32
      h2 = relu(W2 @ h1 + s2)   -- MXU, bf16 inputs, f32 accumulation
      y  = relu(W3 @ h2 + s3)   -- MXU, f32 epilogue, cast fused into the store
    """
    x = x_ref[0]                                   # (C0, T) float32, straight from NCHW
    c0 = x.shape[0]

    # ---- layer 1 ----
    if c0 <= 8:
        # Tiny-K contraction on the VPU (c0 broadcast-FMAs per output block);
        # avoids a heavily under-utilized K<8 MXU pass.  Exact f32 math.
        w1 = w1_ref[...]                           # (C1, C0) float32
        h = w1[:, 0:1] * x[0:1, :]
        for i in range(1, c0):
            h = h + w1[:, i:i + 1] * x[i:i + 1, :]
    else:
        h = jnp.dot(w1_ref[...].astype(jnp.bfloat16), x.astype(jnp.bfloat16),
                    preferred_element_type=jnp.float32)
    h = jnp.maximum(h + sh1_ref[...], 0.0)

    # ---- layer 2 ----
    h = jnp.dot(w2_ref[...], h.astype(jnp.bfloat16),
                preferred_element_type=jnp.float32)
    h = jnp.maximum(h + sh2_ref[...], 0.0)

    # ---- layer 3 (+ output cast fused into the epilogue) ----
    h = jnp.dot(w3_ref[...], h.astype(jnp.bfloat16),
                preferred_element_type=jnp.float32)
    o_ref[0] = jnp.maximum(h + sh3_ref[...], 0.0).astype(o_ref.dtype)


# ------------------------------- wrapper -------------------------------------
def _choose_tile_hw(n, hw, requested):
    """Large lane tile for HBM efficiency.  The batch axis usually provides >=2
    grid steps for megacore; if n == 1, split HW so v7x's 2nd TensorCore has work."""
    requested = max(128, _round_up(requested, 128))
    if hw > requested:
        return requested                      # multiple of 128; edge tile is masked
    if n == 1 and hw >= 256:
        return min(hw, _round_up((hw + 1) // 2, 128))
    return hw                                 # full-extent tile (always legal)


def plainnet_forward(x_nchw, kernel_params, *, tile_hw=2048,
                     out_dtype=jnp.bfloat16):
    """x_nchw: (N, C_in, H, W) float32 -> (N, C_out, H, W) out_dtype.

    out_dtype defaults to bf16 (halves the dominant output HBM traffic);
    pass out_dtype=jnp.float32 for exact dtype parity with the PyTorch module."""
    N, C0, H, W = x_nchw.shape
    (w1, sh1), (w2, sh2), (w3, sh3) = kernel_params
    C1, C2, C3 = w1.shape[0], w2.shape[0], w3.shape[0]
    HW = H * W

    # Free reshape (contiguous trailing dims merge): kernel reads/writes NCHW directly.
    x3d = x_nchw.reshape(N, C0, HW)

    T = _choose_tile_hw(N, HW, tile_hw)
    grid = (N, pl.cdiv(HW, T))

    row = lambda n, t: (n, 0, t)
    const = lambda n, t: (0, 0)

    flops = 2 * N * HW * (C0 * C1 + C1 * C2 + C2 * C3)
    bytes_accessed = (int(x3d.size) * x3d.dtype.itemsize
                      + N * HW * C3 * np.dtype(out_dtype).itemsize
                      + sum(int(a.size) * a.dtype.itemsize
                            for a in (w1, sh1, w2, sh2, w3, sh3)))

    out3d = pl.pallas_call(
        plainnet_kernel,
        out_shape=jax.ShapeDtypeStruct((N, C3, HW), out_dtype),
        grid_spec=pltpu.PrefetchScalarGridSpec(
            num_scalar_prefetch=0,
            grid=grid,
            in_specs=[
                pl.BlockSpec((1, C0, T), row),
                # Weights / shifts: constant index_map -> fetched once and kept
                # resident in VMEM (~0.1 MiB total for the default config).
                pl.BlockSpec((C1, C0), const), pl.BlockSpec((C1, 1), const),
                pl.BlockSpec((C2, C1), const), pl.BlockSpec((C2, 1), const),
                pl.BlockSpec((C3, C2), const), pl.BlockSpec((C3, 1), const),
            ],
            out_specs=pl.BlockSpec((1, C3, T), row),
        ),
        compiler_params=pltpu.CompilerParams(
            dimension_semantics=("parallel", "parallel"),
            vmem_limit_bytes=32 * 1024 * 1024),   # safe headroom on v5e/v6e/v7x
        cost_estimate=pl.CostEstimate(flops=int(flops), transcendentals=0,
                                      bytes_accessed=int(bytes_accessed)),
    )(x3d, w1, sh1, w2, sh2, w3, sh3)

    return out3d.reshape(N, C3, H, W)             # free reshape: stays NCHW throughout


# ------------------------- parameter construction ---------------------------
def make_params(key, input_channels, layer_cfg, eps=1e-5):
    """Per layer, fold eval-mode BN and the conv bias into the matmul:
         y = relu((gamma/sqrt(var+eps) * W) @ x + shift)
    Returns:
      kernel_params[i] = (W_folded [cout, cin]  (f32 for the small-K layer-1 VPU
                          path, bf16 otherwise), shift f32 [cout, 1])
      ref_params[i]    = (W_folded f32 [cout, cin], shift f32 [cout, 1])
    """
    kernel_params, ref_params = [], []
    cin = input_channels
    for li, cout in enumerate(layer_cfg):
        key, kw, kb, kg, kbe, km, kv = jax.random.split(key, 7)
        w = 0.1 * jax.random.normal(kw, (cout, cin), jnp.float32)       # (cout, cin)
        b = 0.1 * jax.random.normal(kb, (cout,), jnp.float32)
        gamma = 1.0 + 0.1 * jax.random.normal(kg, (cout,), jnp.float32)
        beta = 0.1 * jax.random.normal(kbe, (cout,), jnp.float32)
        rmean = 0.1 * jax.random.normal(km, (cout,), jnp.float32)
        rvar = 1.0 + 0.1 * jax.random.uniform(kv, (cout,), jnp.float32)

        inv_std = gamma / jnp.sqrt(rvar + eps)
        w_folded = w * inv_std[:, None]                   # BN scale folded into W
        shift = ((b - rmean) * inv_std + beta).reshape(cout, 1)
        ref_params.append((w_folded, shift))

        keep_f32 = (li == 0 and cin <= 8)                 # layer-1 VPU path is f32
        kernel_params.append(
            (w_folded if keep_f32 else w_folded.astype(jnp.bfloat16), shift))
        cin = cout
    return kernel_params, ref_params


def reference_forward(x_nchw, ref_params, *, mimic_bf16=False):
    """Plain-JAX reference in NCHW.  mimic_bf16=True reproduces the kernel's
    bf16 matmul inputs (f32 accumulation) for a tight correctness check."""
    N, C, H, W = x_nchw.shape
    h = x_nchw.reshape(N, C, H * W)
    for li, (w, sh) in enumerate(ref_params):
        use_bf16 = mimic_bf16 and not (li == 0 and w.shape[1] <= 8)
        if use_bf16:
            h = jnp.einsum('oc,nct->not', w.astype(jnp.bfloat16),
                           h.astype(jnp.bfloat16),
                           preferred_element_type=jnp.float32)
        else:
            h = jnp.einsum('oc,nct->not', w, h,
                           preferred_element_type=jnp.float32)
        h = jnp.maximum(h + sh[None, :, :], 0.0)
    Cout = ref_params[-1][0].shape[0]
    return h.reshape(N, Cout, H, W)


# --------------------------------- main --------------------------------------
if __name__ == "__main__":
    key = jax.random.PRNGKey(0)
    kx, kp = jax.random.split(key)

    input_channels = 3
    layer_cfg = [128, 128, 256]
    N, H, W = 2, 16, 16                  # HW = 256 per image -> grid (2, 1)

    x = jax.random.normal(kx, (N, input_channels, H, W), jnp.float32)   # NCHW
    kernel_params, ref_params = make_params(kp, input_channels, layer_cfg)

    out = plainnet_forward(x, kernel_params)          # bf16 output (default)
    out = jax.block_until_ready(out)
    assert out.shape == (N, layer_cfg[-1], H, W)
    assert out.dtype == jnp.bfloat16
    out_f32 = out.astype(jnp.float32)

    # Tight check: reference with the same bf16 matmul inputs as the kernel,
    # rounded to the same bf16 output dtype.
    ref_b = reference_forward(x, ref_params, mimic_bf16=True)
    ref_b = ref_b.astype(jnp.bfloat16).astype(jnp.float32)
    assert jnp.allclose(out_f32, ref_b, atol=2e-2, rtol=2e-2)

    # Loose check: full-f32 math of conv + BN(eval) + ReLU.
    ref_f = reference_forward(x, ref_params, mimic_bf16=False)
    assert jnp.allclose(out_f32, ref_f, atol=7e-2, rtol=7e-2)

    print("KERNEL_OK")
</pallas_src>

<mosaic_0001>
module attributes {stable_mosaic.version = 11 : i64} {
  func.func @plainnet_kernel(%arg0: i32, %arg1: i32, %arg2: memref<1x3x256xf32, #tpu.memory_space<vmem>>, %arg3: memref<128x3xf32, #tpu.memory_space<vmem>>, %arg4: memref<128x1xf32, #tpu.memory_space<vmem>>, %arg5: memref<128x128xbf16, #tpu.memory_space<vmem>>, %arg6: memref<128x1xf32, #tpu.memory_space<vmem>>, %arg7: memref<256x128xbf16, #tpu.memory_space<vmem>>, %arg8: memref<256x1xf32, #tpu.memory_space<vmem>>, %arg9: memref<1x256x256xbf16, #tpu.memory_space<vmem>>) attributes {dimension_semantics = [#tpu.dimension_semantics<parallel>, #tpu.dimension_semantics<parallel>], iteration_bounds = array<i64: 2, 1>, scalar_prefetch = 0 : i64, scratch_operands = 0 : i64, tpu.core_type = #tpu.core_type<tc>, window_params = [{transform_indices = @transform_0, window_bounds = array<i64: 1, 3, 256>}, {pipeline_mode = #tpu.pipeline_mode<synchronous>, transform_indices = @transform_1, window_bounds = array<i64: 128, 3>}, {pipeline_mode = #tpu.pipeline_mode<synchronous>, transform_indices = @transform_2, window_bounds = array<i64: 128, 1>}, {pipeline_mode = #tpu.pipeline_mode<synchronous>, transform_indices = @transform_3, window_bounds = array<i64: 128, 128>}, {pipeline_mode = #tpu.pipeline_mode<synchronous>, transform_indices = @transform_4, window_bounds = array<i64: 128, 1>}, {pipeline_mode = #tpu.pipeline_mode<synchronous>, transform_indices = @transform_5, window_bounds = array<i64: 256, 128>}, {pipeline_mode = #tpu.pipeline_mode<synchronous>, transform_indices = @transform_6, window_bounds = array<i64: 256, 1>}, {transform_indices = @transform_7, window_bounds = array<i64: 1, 256, 256>}]} {
    %c0 = arith.constant 0 : index
    %c0_0 = arith.constant 0 : index
    %c0_1 = arith.constant 0 : index
    %0 = vector.load %arg2[%c0, %c0_0, %c0_1] : memref<1x3x256xf32, #tpu.memory_space<vmem>>, vector<1x3x256xf32>
    %1 = vector.shape_cast %0 : vector<1x3x256xf32> to vector<3x256xf32>
    %c0_2 = arith.constant 0 : index
    %c0_3 = arith.constant 0 : index
    %2 = vector.load %arg3[%c0_2, %c0_3] : memref<128x3xf32, #tpu.memory_space<vmem>>, vector<128x3xf32>
    %3 = vector.extract_strided_slice %2 {offsets = [0, 0], sizes = [128, 1], strides = [1, 1]} : vector<128x3xf32> to vector<128x1xf32>
    %4 = vector.extract_strided_slice %1 {offsets = [0, 0], sizes = [1, 256], strides = [1, 1]} : vector<3x256xf32> to vector<1x256xf32>
    %5 = vector.broadcast %3 : vector<128x1xf32> to vector<128x256xf32>
    %6 = vector.broadcast %4 : vector<1x256xf32> to vector<128x256xf32>
    %7 = arith.mulf %5, %6 : vector<128x256xf32>
    %8 = vector.extract_strided_slice %2 {offsets = [0, 1], sizes = [128, 1], strides = [1, 1]} : vector<128x3xf32> to vector<128x1xf32>
    %9 = vector.extract_strided_slice %1 {offsets = [1, 0], sizes = [1, 256], strides = [1, 1]} : vector<3x256xf32> to vector<1x256xf32>
    %10 = vector.broadcast %8 : vector<128x1xf32> to vector<128x256xf32>
    %11 = vector.broadcast %9 : vector<1x256xf32> to vector<128x256xf32>
    %12 = arith.mulf %10, %11 : vector<128x256xf32>
    %13 = arith.addf %7, %12 : vector<128x256xf32>
    %14 = vector.extract_strided_slice %2 {offsets = [0, 2], sizes = [128, 1], strides = [1, 1]} : vector<128x3xf32> to vector<128x1xf32>
    %15 = vector.extract_strided_slice %1 {offsets = [2, 0], sizes = [1, 256], strides = [1, 1]} : vector<3x256xf32> to vector<1x256xf32>
    %16 = vector.broadcast %14 : vector<128x1xf32> to vector<128x256xf32>
    %17 = vector.broadcast %15 : vector<1x256xf32> to vector<128x256xf32>
    %18 = arith.mulf %16, %17 : vector<128x256xf32>
    %19 = arith.addf %13, %18 : vector<128x256xf32>
    %c0_4 = arith.constant 0 : index
    %c0_5 = arith.constant 0 : index
    %20 = vector.load %arg4[%c0_4, %c0_5] : memref<128x1xf32, #tpu.memory_space<vmem>>, vector<128x1xf32>
    %21 = vector.broadcast %20 : vector<128x1xf32> to vector<128x256xf32>
    %22 = arith.addf %19, %21 : vector<128x256xf32>
    %cst = arith.constant 0.000000e+00 : f32
    %23 = vector.broadcast %cst : f32 to vector<128x256xf32>
    %24 = arith.maximumf %22, %23 : vector<128x256xf32>
    %c0_6 = arith.constant 0 : index
    %c0_7 = arith.constant 0 : index
    %25 = vector.load %arg5[%c0_6, %c0_7] : memref<128x128xbf16, #tpu.memory_space<vmem>>, vector<128x128xbf16>
    %26 = arith.truncf %24 : vector<128x256xf32> to vector<128x256xbf16>
    %cst_8 = arith.constant dense<0.000000e+00> : vector<128x256xf32>
    %27 = tpu.matmul %25, %26, %cst_8 {dimension_numbers = #tpu.dot_dimension_numbers<[1], [0], [0], [1], [0, 0, 1, 1], [], []>} : vector<128x128xbf16>, vector<128x256xbf16>, vector<128x256xf32> -> vector<128x256xf32>
    %c0_9 = arith.constant 0 : index
    %c0_10 = arith.constant 0 : index
    %28 = vector.load %arg6[%c0_9, %c0_10] : memref<128x1xf32, #tpu.memory_space<vmem>>, vector<128x1xf32>
    %29 = vector.broadcast %28 : vector<128x1xf32> to vector<128x256xf32>
    %30 = arith.addf %27, %29 : vector<128x256xf32>
    %cst_11 = arith.constant 0.000000e+00 : f32
    %31 = vector.broadcast %cst_11 : f32 to vector<128x256xf32>
    %32 = arith.maximumf %30, %31 : vector<128x256xf32>
    %c0_12 = arith.constant 0 : index
    %c0_13 = arith.constant 0 : index
    %33 = vector.load %arg7[%c0_12, %c0_13] : memref<256x128xbf16, #tpu.memory_space<vmem>>, vector<256x128xbf16>
    %34 = arith.truncf %32 : vector<128x256xf32> to vector<128x256xbf16>
    %cst_14 = arith.constant dense<0.000000e+00> : vector<256x256xf32>
    %35 = tpu.matmul %33, %34, %cst_14 {dimension_numbers = #tpu.dot_dimension_numbers<[1], [0], [0], [1], [0, 0, 1, 1], [], []>} : vector<256x128xbf16>, vector<128x256xbf16>, vector<256x256xf32> -> vector<256x256xf32>
    %c0_15 = arith.constant 0 : index
    %c0_16 = arith.constant 0 : index
    %36 = vector.load %arg8[%c0_15, %c0_16] : memref<256x1xf32, #tpu.memory_space<vmem>>, vector<256x1xf32>
    %37 = vector.broadcast %36 : vector<256x1xf32> to vector<256x256xf32>
    %38 = arith.addf %35, %37 : vector<256x256xf32>
    %cst_17 = arith.constant 0.000000e+00 : f32
    %39 = vector.broadcast %cst_17 : f32 to vector<256x256xf32>
    %40 = arith.maximumf %38, %39 : vector<256x256xf32>
    %41 = arith.truncf %40 : vector<256x256xf32> to vector<256x256xbf16>
    %c0_18 = arith.constant 0 : index
    %c0_19 = arith.constant 0 : index
    %c0_20 = arith.constant 0 : index
    %42 = vector.load %arg9[%c0_18, %c0_19, %c0_20] : memref<1x256x256xbf16, #tpu.memory_space<vmem>>, vector<1x256x256xbf16>
    %43 = vector.shape_cast %42 : vector<1x256x256xbf16> to vector<256x256xbf16>
    %44 = vector.shape_cast %41 : vector<256x256xbf16> to vector<1x256x256xbf16>
    tpu.vector_store %arg9[%c0_18, %c0_19, %c0_20], %44 {strides = array<i32>} : memref<1x256x256xbf16, #tpu.memory_space<vmem>>, vector<1x256x256xbf16>,
    return
  }
  func.func @transform_0(%arg0: i32, %arg1: i32) -> (i32, i32, i32) {
    %c0_i32 = arith.constant 0 : i32
    %c0_i32_0 = arith.constant 0 : i32
    return %arg0, %c0_i32, %arg1 : i32, i32, i32
  }
  func.func @transform_1(%arg0: i32, %arg1: i32) -> (i32, i32) {
    %c0_i32 = arith.constant 0 : i32
    %c0_i32_0 = arith.constant 0 : i32
    %c0_i32_1 = arith.constant 0 : i32
    return %c0_i32, %c0_i32_0 : i32, i32
  }
  func.func @transform_2(%arg0: i32, %arg1: i32) -> (i32, i32) {
    %c0_i32 = arith.constant 0 : i32
    %c0_i32_0 = arith.constant 0 : i32
    %c0_i32_1 = arith.constant 0 : i32
    return %c0_i32, %c0_i32_0 : i32, i32
  }
  func.func @transform_3(%arg0: i32, %arg1: i32) -> (i32, i32) {
    %c0_i32 = arith.constant 0 : i32
    %c0_i32_0 = arith.constant 0 : i32
    %c0_i32_1 = arith.constant 0 : i32
    return %c0_i32, %c0_i32_0 : i32, i32
  }
  func.func @transform_4(%arg0: i32, %arg1: i32) -> (i32, i32) {
    %c0_i32 = arith.constant 0 : i32
    %c0_i32_0 = arith.constant 0 : i32
    %c0_i32_1 = arith.constant 0 : i32
    return %c0_i32, %c0_i32_0 : i32, i32
  }
  func.func @transform_5(%arg0: i32, %arg1: i32) -> (i32, i32) {
    %c0_i32 = arith.constant 0 : i32
    %c0_i32_0 = arith.constant 0 : i32
    %c0_i32_1 = arith.constant 0 : i32
    return %c0_i32, %c0_i32_0 : i32, i32
  }
  func.func @transform_6(%arg0: i32, %arg1: i32) -> (i32, i32) {
    %c0_i32 = arith.constant 0 : i32
    %c0_i32_0 = arith.constant 0 : i32
    %c0_i32_1 = arith.constant 0 : i32
    return %c0_i32, %c0_i32_0 : i32, i32
  }
  func.func @transform_7(%arg0: i32, %arg1: i32) -> (i32, i32, i32) {
    %c0_i32 = arith.constant 0 : i32
    %c0_i32_0 = arith.constant 0 : i32
    return %arg0, %c0_i32, %arg1 : i32, i32, i32
  }
}

</mosaic_0001>

<bundles_post_ra>
// kernel: tpu_custom_call.1
= control target key start
LH: loop header
LB: loop body
LE: loop exit
PB: predicated region body
PF: predicated region fallthrough
CT: control target
= control target key end

     0   :  { %12 = vsyncpa [#allocation3], 0  ;;  %s3255_s0 = inlined_call_operand.vmem [shape: f32[2,3,256], index: 0, kind: input, shape index: {}]   ;;  %s3256_s1 = inlined_call_operand.vmem [shape: f32[128,3], index: 1, kind: input, shape index: {}]   ;;  %s3257_s2 = inlined_call_operand.vmem [shape: f32[128,1], index: 2, kind: input, shape index: {}]   ;;  %s3258_s3 = inlined_call_operand.vmem [shape: bf16[128,128], index: 3, kind: input, shape index: {}]   ;;  %s3259_s4 = inlined_call_operand.vmem [shape: f32[128,1], index: 4, kind: input, shape index: {}]   ;;  %s3260_s5 = inlined_call_operand.vmem [shape: bf16[256,128], index: 5, kind: input, shape index: {}]   ;;  %s3261_s6 = inlined_call_operand.vmem [shape: f32[256,1], index: 6, kind: input, shape index: {}]   ;;  %s3262_s7 = inlined_call_operand.hbm [shape: bf16[2,256,256], index: 7, kind: output, shape index: {}]  }
   0x1   :  { %14 = vsyncpa [#allocation3 + $0x1], 0  ;;  %s2498_s24 = smov 0   ;;  %s2500_s25 = smov 0  }
   0x2   :  { %s2502_s26 = smov 0   ;;  %s2504_s27 = smov 0  }
   0x3   :  { %s2506_s28 = smov 0   ;;  %s2508_s29 = smov 0  }
   0x4 LB: > { %s2142_s30 = sadd.s32 4294967295, %s2450_s29   ;;  %s2143_s8 = sadd.s32 4294967294, %s2450_s29   ;;  %s2450_s29 = sphi %s2508_s29, %s20_s29   ;;  %s2446_s28 = sphi %s2506_s28, %s3269_s28   ;;  %s2442_s27 = sphi %s2504_s27, %s3268_s27   ;;  %s2438_s26 = sphi %s2502_s26, %s3267_s26   ;;  %s2434_s25 = sphi %s2500_s25, %s3266_s25   ;;  %s2430_s24 = sphi %s2498_s24, %s3265_s24  }
   0x5   : > { %s32_s9 = sadd.s32 1, %s2446_s28  ;;  %s195_s10 = sadd.s32 1, %s2438_s26 }
   0x6   : > { %p34_p0 = scmp.ge.s32.totalorder %s32_s9, 2  ;;  %p205_p1 = scmp.ne.s32.totalorder %s2438_s26, %s2434_s25 }
   0x7   : > { %p206_p2 = scmp.eq.s32.totalorder %s2142_s30, 1  ;;  %p211_p3 = scmp.ne.s32.totalorder %s2434_s25, %s2430_s24 }
   0x8   : > { %s3271_s9 = smov (%p34_p0, %s32_s9), 0  ;;  %p212_p5 = scmp.eq.s32.totalorder %s2143_s8, 1 }
   0x9   : > { %p2538_p4 = por %p206_p2, %p205_p1  ;;  %s190_s12 = ssub.s32 %s2446_s28, %s3271_s9 }
   0xa   : > { %p2146_p6 = scmp.ge.s32.totalorder %s2450_s29, 1  ;;  %p193_p7 = scmp.eq.s32.totalorder %s190_s12, 0 }
   0xb   : > { %p2545_p8 = por %p212_p5, %p211_p3  ;;  %p261_p9 = scmp.lt.s32.totalorder %s2450_s29, 3 }
   0xc   : > { %s2551_s14 = scalar_select %p193_p7, %s2438_s26, %s195_s10  }
   0xd   : > { %p262_p10 = pnand %p2146_p6, %p261_p9 }
   0xe   : > { %v310_v0 = vld [vmem:[%s3256_s1] sm:$0xff] (!%p262_p10)  ;;  %v2452_v1 = vmov (!%p262_p10), 2   ;;  %v2453_v2 = vmov (!%p262_p10), 1   ;;  %v312_v3 = vld [vmem:[%s3256_s1 + $0x10] sm:$0xff] (!%p262_p10)  ;;  %v311_v4 = vld [vmem:[%s3256_s1 + $0x8] sm:$0xff] (!%p262_p10)  ;;  %v2454_v5 = vmov (!%p262_p10), 0   ;;  %v407_v53 = vlaneseq (!%p262_p10) }
   0xf   : > { %265 = sbr.rel (%p262_p10) target bundleno = 938 (0x3aa), region = 48  ;;  %2322 = vset.pattern.permute.xlu0 (!%p262_p10), %v2452_v1  ;;  %2321 = vset.pattern.permute.xlu1 (!%p262_p10), %v2453_v2  ;;  %v315_v6 = vld [vmem:[%s3256_s1 + $0x28] sm:$0xff] (!%p262_p10)  ;;  %v314_v7 = vld [vmem:[%s3256_s1 + $0x20] sm:$0xff] (!%p262_p10)  ;;  %v317_v8 = vld [vmem:[%s3256_s1 + $0x38] sm:$0xff] (!%p262_p10)  ;;  %p298_p11 = scmp.lt.s32.totalorder (!%p262_p10), %s2442_s27, 1 }
  0x10   : > { %604 = vperm.xlu0 (!%p262_p10), %2322, %v310_v0   ;;  %458 = vperm.xlu1 (!%p262_p10), %2321, %v310_v0   ;;  %v2581_v9 = vld [vmem:[%s3256_s1 + $0x48] sm:$0xff] (!%p262_p10)  ;;  %v313_v10 = vld [vmem:[%s3256_s1 + $0x18] sm:$0xff] (!%p262_p10)  ;;  %v749_v14 = vld [vmem:[%s3257_s2] sm:$0xff] (!%p262_p10)  ;;  %v408_v57 = vshrl.u32 (!%p262_p10), %v407_v53, 7  ;;  %s294_s20 = sand.u32 (!%p262_p10), 1, %s2434_s25   ;;  %s2244_s23 = sshll.u32 (!%p262_p10), %s2442_s27, 12 }
  0x11   : > { %1117 = vmatprep.mubr.bf16.mxu0 (!%p262_p10), %v2454_v5  ;;  %1638 = vmatprep.mubr.bf16.mxu1 (!%p262_p10), %v2454_v5  ;;  %v2591_v11 = vld [vmem:[%s3256_s1 + $0x58] sm:$0xff] (!%p262_p10)  ;;  %v2597_v12 = vld [vmem:[%s3256_s1 + $0x68] sm:$0xff] (!%p262_p10)  ;;  %v316_v16 = vld [vmem:[%s3256_s1 + $0x30] sm:$0xff] (!%p262_p10)  ;;  %s2147_s21 = sshll.u32 (!%p262_p10), %s294_s20, 8  ;;  %s3209_s15 = scalar_lea.sflag (!%p262_p10), [#allocation3], %s294_s20 }
  0x12   : > { %v2604_v13 = vld [vmem:[%s3256_s1 + $0x78] sm:$0xff] (!%p262_p10)  ;;  %v750_v15 = vld [vmem:[%s3257_s2 + $0x8] sm:$0xff] (!%p262_p10)  ;;  %v751_v17 = vld [vmem:[%s3257_s2 + $0x10] sm:$0xff] (!%p262_p10)  ;;  %v523_v62 = vsub.s32 (!%p262_p10), 1, %v408_v57  ;;  %s2455_s16 = smov (!%p262_p10), [#allocation2]  }
  0x13   : > { %v753_v18 = vld [vmem:[%s3257_s2 + $0x20] sm:$0xff] (!%p262_p10)  ;;  %v752_v19 = vld [vmem:[%s3257_s2 + $0x18] sm:$0xff] (!%p262_p10)  ;;  %v755_v20 = vld [vmem:[%s3257_s2 + $0x30] sm:$0xff] (!%p262_p10)  ;;  %s2376_s17 = sshll.u32 (!%p262_p10), %s2455_s16, 4  ;;  %s2377_s17 = int_to_ptr.vmem [resolvable:$false] %s2376_s17 }
  0x14   : > { %612 = vperm.xlu0 (!%p262_p10), %2322, %v312_v3   ;;  %462 = vperm.xlu1 (!%p262_p10), %2321, %v311_v4   ;;  %v757_v21 = vld [vmem:[%s3257_s2 + $0x40] sm:$0xff] (!%p262_p10)  ;;  %v759_v22 = vld [vmem:[%s3257_s2 + $0x50] sm:$0xff] (!%p262_p10)  ;;  %v754_v23 = vld [vmem:[%s3257_s2 + $0x28] sm:$0xff] (!%p262_p10)  ;;  %s2378_s18 = scalar_lea.vmem (!%p262_p10), %s2377_s17, 8192 }
  0x15   : > { %v318_v24 = vld [vmem:[%s3256_s1 + $0x40] sm:$0xff] (!%p262_p10)  ;;  %v764_v26 = vld [vmem:[%s3257_s2 + $0x78] sm:$0xff] (!%p262_p10)  ;;  %v942_v27 = vld [vmem:[%s3259_s4 + $0x8] sm:$0xff] (!%p262_p10) }
  0x16   : > { %v761_v25 = vld [vmem:[%s3257_s2 + $0x60] sm:$0xff]  ;;  %v944_v28 = vld [vmem:[%s3259_s4 + $0x18] sm:$0xff]  ;;  %v946_v29 = vld [vmem:[%s3259_s4 + $0x28] sm:$0xff]  ;;  %s299_s19 = scalar_select %p298_p11, %s2442_s27, 1 }
  0x17   : > { %v756_v30 = vld [vmem:[%s3257_s2 + $0x38] sm:$0xff]  ;;  %v320_v32 = vld [vmem:[%s3256_s1 + $0x50] sm:$0xff]  ;;  %v950_v33 = vld [vmem:[%s3259_s4 + $0x48] sm:$0xff] }
  0x18   : > { %624 = vperm.xlu0 %2322, %v315_v6   ;;  %2323 = vset.pattern.permute.xlu1 %v2452_v1  ;;  %v948_v31 = vld [vmem:[%s3259_s4 + $0x38] sm:$0xff]  ;;  %v954_v35 = vld [vmem:[%s3259_s4 + $0x68] sm:$0xff]  ;;  %v322_v41 = vld [vmem:[%s3256_s1 + $0x60] sm:$0xff]  ;;  %s2211_s22 = sshll.u32 %s299_s19, 3 }
  0x19   : > { %608 = vperm.xlu1 %2323, %v311_v4   ;;  %v952_v34 = vld [vmem:[%s3259_s4 + $0x58] sm:$0xff]  ;;  %v758_v37 = vld [vmem:[%s3257_s2 + $0x48] sm:$0xff]  ;;  %s305_s12 = scalar_lea.vmem %s3255_s0, %s2211_s22  ;;  %v324_v63 = vld [vmem:[%s3256_s1 + $0x70] sm:$0xff]  ;;  %s3154_s22 = scalar_lea.vmem [#allocation2], %s2147_s21 }
  0x1a   : > { %v956_v36 = vld [vmem:[%s3259_s4 + $0x78] sm:$0xff]  ;;  %v1279_v40 = vld [vmem:[%s3261_s6 + $0x8] sm:$0xff]  ;;  %s2063_s30 = sshll.u32 %s3154_s22, 4  ;;  %s3203_s30 = int_to_ptr.vmem [resolvable:$true] %s2063_s30 }
  0x1b   : > { %v1281_v44 = vld [vmem:[%s3261_s6 + $0x18] sm:$0xff]  ;;  %v1283_v46 = vld [vmem:[%s3261_s6 + $0x28] sm:$0xff]  ;;  %s2372_s27 = scalar_lea.vmem %s3203_s30, 4096  ;;  %p2379_p1 = scmp.lt.s32.totalorder %s3203_s30, %s2377_s17 }
  0x1c   : > { %2330 = vset.pattern.permute.xlu0 %v2453_v2  ;;  %v1285_v48 = vld [vmem:[%s3261_s6 + $0x38] sm:$0xff]  ;;  %v1287_v51 = vld [vmem:[%s3261_s6 + $0x48] sm:$0xff]  ;;  %p2373_p12 = scmp.ne.s32.totalorder %s3203_s30, %s2372_s27  ;;  %p2380_p2 = scmp.lt.s32.totalorder %s2378_s18, %s2372_s27 }
  0x1d   : > { %474 = vperm.xlu0 %2330, %v314_v7   ;;  %2324 = vset.pattern.permute.xlu1 %v2454_v5  ;;  %v1289_v55 = vld [vmem:[%s3261_s6 + $0x58] sm:$0xff]  ;;  %v1291_v60 = vld [vmem:[%s3261_s6 + $0x68] sm:$0xff] }
  0x1e   : > { %338 = vperm.xlu1 %2324, %v312_v3   ;;  %v760_v58 = vld [vmem:[%s3257_s2 + $0x58] sm:$0xff]  ;;  %p2374_p13 = pnand %p2373_p12, %p2538_p4  ;;  %p2381_p3 = por %p2380_p2, %p2379_p1 }
  0x20   : > { %p2375_p0 = pneg %p2374_p13 }
  0x21   : > { %486 = vperm.xlu0 %2330, %v317_v8  }
  0x22   : > { %2325 = vset.pattern.permute.xlu1 %v2453_v2  ;;  %p2382_p5 = pnand %p2381_p3, %p2375_p0 }
  0x23   : > { %466 = vperm.xlu1 %2325, %v312_v3   ;;  %v309_v3 = vld [vmem:[%s305_s12] sm:$0x77]  ;;  %s3201_s12 = scalar_lea.hbm %s3262_s7, %s2244_s23 }
  0x25   : > { %494 = vperm.xlu0 %2330, %v2581_v9  }
  0x27   : > { %470 = vperm.xlu1 %2325, %v313_v10  }
  0x29   : > { %502 = vperm.xlu0 %2330, %v2591_v11  }
  0x2b   : > { %2326 = vset.pattern.permute.xlu1 %v2452_v1 }
  0x2c   : > { %616 = vperm.xlu1 %2326, %v313_v10  }
  0x2d   : > { %510 = vperm.xlu0 %2330, %v2597_v12  }
  0x30   : > { %2327 = vset.pattern.permute.xlu1 %v2454_v5 }
  0x31   : > { %518 = vperm.xlu0 %2330, %v2604_v13   ;;  %767 = vperm.xlu1 %2327, %v749_v14  }
  0x35   : > { %2345 = vset.pattern.permute.xlu0 %v2454_v5  ;;  %348 = vperm.xlu1 %2327, %v314_v7  }
  0x36   : > { %328 = vperm.xlu0 %2345, %v310_v0   ;;  %v527_v0 = vsub.s32 5, %v408_v57 }
  0x38   : > { %v528_v14 = vrot.slane %v309_v3, %v527_v0 }
  0x39   : > { %353 = vperm.xlu1 %2327, %v315_v6  }
  0x3a   : > { %333 = vperm.xlu0 %2345, %v311_v4  }
  0x3d   : > { %2328 = vset.pattern.permute.xlu1 %v2453_v2 }
  0x3e   : > { %343 = vperm.xlu0 %2345, %v313_v10   ;;  %478 = vperm.xlu1 %2328, %v315_v6   ;;  %v1293_v6 = vld [vmem:[%s3261_s6 + $0x78] sm:$0xff]  ;;  %v524_v10 = vrot.slane %v309_v3, %v523_v62 }
  0x42   : > { %772 = vperm.xlu0 %2345, %v750_v15   ;;  %2329 = vset.pattern.permute.xlu1 %v2452_v1  ;;  %v1295_v15 = vld [vmem:[%s3261_s6 + $0x88] sm:$0xff] }
  0x43   : > { %620 = vperm.xlu1 %2329, %v314_v7   ;;  %v409_v7 = vsub.s32 0, %v408_v57 }
  0x46   : > { %358 = vperm.xlu0 %2345, %v316_v16  }
  0x47   : > { %2331 = vset.pattern.permute.xlu1 %v2454_v5 }
  0x48   : > { %777 = vperm.xlu1 %2331, %v751_v17  }
  0x4a   : > { %787 = vperm.xlu0 %2345, %v753_v18  }
  0x4c   : > { %782 = vperm.xlu1 %2331, %v752_v19  }
  0x4e   : > { %373 = vperm.xlu0 %2345, %v2581_v9  }
  0x50   : > { %363 = vperm.xlu1 %2331, %v317_v8  }
  0x52   : > { %797 = vperm.xlu0 %2345, %v755_v20   ;;  %v2777_v20 = vrot.slane %v524_v10, %v523_v62 }
  0x54   : > { %2332 = vset.pattern.permute.xlu1 %v2453_v2 }
  0x55   : > { %482 = vperm.xlu1 %2332, %v316_v16  }
  0x56   : > { %383 = vperm.xlu0 %2345, %v2591_v11  }
  0x59   : > { %2333 = vset.pattern.permute.xlu1 %v2452_v1 }
  0x5a   : > { %807 = vperm.xlu0 %2345, %v757_v21   ;;  %628 = vperm.xlu1 %2333, %v316_v16   ;;  %v410_v16 = vrot.slane %v309_v3, %v409_v7 }
  0x5e   : > { %393 = vperm.xlu0 %2345, %v2597_v12   ;;  %632 = vperm.xlu1 %2333, %v317_v8   ;;  %v413_v8 = vsub.s32 4, %v408_v57 }
  0x60   : > { %v414_v17 = vrot.slane %v309_v3, %v413_v8 }
  0x62   : > { %817 = vperm.xlu0 %2345, %v759_v22   ;;  %2334 = vset.pattern.permute.xlu1 %v2454_v5 }
  0x63   : > { %792 = vperm.xlu1 %2334, %v754_v23   ;;  %v2779_v23 = vrot.slane %v528_v14, %v523_v62 }
  0x66   : > { %403 = vperm.xlu0 %2345, %v2604_v13  }
  0x67   : > { %368 = vperm.xlu1 %2334, %v318_v24  }
  0x6a   : > { %827 = vperm.xlu0 %2345, %v761_v25   ;;  %v2784_v25 = vrot.slane %v410_v16, %v409_v7 }
  0x6b   : > { %2335 = vset.pattern.permute.xlu1 %v2453_v2 }
  0x6c   : > { %490 = vperm.xlu1 %2335, %v318_v24  }
  0x6e   : > { %842 = vperm.xlu0 %2345, %v764_v26   ;;  %v2786_v26 = vrot.slane %v414_v17, %v409_v7 }
  0x70   : > { %2336 = vset.pattern.permute.xlu1 %v2452_v1 }
  0x71   : > { %636 = vperm.xlu1 %2336, %v318_v24   ;;  %v1297_v24 = vld [vmem:[%s3261_s6 + $0x98] sm:$0xff] }
  0x72   : > { %964 = vperm.xlu0 %2345, %v942_v27  }
  0x75   : > { %640 = vperm.xlu1 %2336, %v2581_v9  }
  0x76   : > { %974 = vperm.xlu0 %2345, %v944_v28  }
  0x79   : > { %2337 = vset.pattern.permute.xlu1 %v2454_v5 }
  0x7a   : > { %984 = vperm.xlu0 %2345, %v946_v29   ;;  %802 = vperm.xlu1 %2337, %v756_v30  }
  0x7e   : > { %994 = vperm.xlu0 %2345, %v948_v31   ;;  %378 = vperm.xlu1 %2337, %v320_v32  }
  0x82   : > { %1004 = vperm.xlu0 %2345, %v950_v33   ;;  %2338 = vset.pattern.permute.xlu1 %v2453_v2 }
  0x83   : > { %498 = vperm.xlu1 %2338, %v320_v32  }
  0x86   : > { %1014 = vperm.xlu0 %2345, %v952_v34   ;;  %v1299_v34 = vld [vmem:[%s3261_s6 + $0xa8] sm:$0xff] }
  0x87   : > { %2339 = vset.pattern.permute.xlu1 %v2452_v1 }
  0x88   : > { %644 = vperm.xlu1 %2339, %v320_v32  }
  0x8a   : > { %1024 = vperm.xlu0 %2345, %v954_v35  }
  0x8c   : > { %648 = vperm.xlu1 %2339, %v2591_v11   ;;  %v669_v11 = vsub.s32 2, %v408_v57 }
  0x8e   : > { %1034 = vperm.xlu0 %2345, %v956_v36   ;;  %v670_v21 = vrot.slane %v309_v3, %v669_v11 }
  0x8f   : > { %v2698_v38 = vpop.permute.xlu1 %458  ;;  %v2700_v39 = vpop.permute.xlu0 %604 }
  0x90   : > { %2340 = vset.pattern.permute.xlu1 %v2454_v5  ;;  %v539_v27 = vmul.f32 %v2777_v20, %v2698_v38  ;;  %v2792_v28 = vrot.slane %v670_v21, %v669_v11  ;;  %v540_v31 = vmul.f32 %v2779_v23, %v2698_v38 }
  0x91   : > { %812 = vperm.xlu1 %2340, %v758_v37  }
  0x92   : > { %1317 = vperm.xlu0 %2345, %v1279_v40   ;;  %v685_v35 = vmul.f32 %v2792_v28, %v2700_v39 }
  0x93   : > { %v2709_v42 = vpop.permute.xlu1 %462  ;;  %v2711_v43 = vpop.permute.xlu0 %612 }
  0x94   : > { %v541_v38 = vmul.f32 %v2777_v20, %v2709_v42 }
  0x95   : > { %388 = vperm.xlu1 %2340, %v322_v41  }
  0x96   : > { %1327 = vperm.xlu0 %2345, %v1281_v44   ;;  %v542_v44 = vmul.f32 %v2779_v23, %v2709_v42  ;;  %v762_v42 = vld [vmem:[%s3257_s2 + $0x68] sm:$0xff] }
  0x97   : > { %v2716_v45 = vpop.permute.xlu0 %624 }
  0x98   : > { %v2721_v47 = vpop.permute.xlu1 %608 }
  0x99   : > { %2341 = vset.pattern.permute.xlu1 %v2453_v2  ;;  %v687_v62 = vmul.f32 %v2792_v28, %v2721_v47 }
  0x9a   : > { %1337 = vperm.xlu0 %2345, %v1283_v46   ;;  %506 = vperm.xlu1 %2341, %v322_v41  }
  0x9c   : > { %v2728_v49 = vpop.permute.xlu0 %474 }
  0x9d   : > { %v2730_v50 = vpop.permute.xlu1 %338 }
  0x9e   : > { %1347 = vperm.xlu0 %2345, %v1285_v48   ;;  %2342 = vset.pattern.permute.xlu1 %v2452_v1 }
  0x9f   : > { %652 = vperm.xlu1 %2342, %v322_v41  }
  0xa0   : > { %v2737_v52 = vpop.permute.xlu0 %486 }
  0xa2   : > { %1357 = vperm.xlu0 %2345, %v1287_v51   ;;  %v2739_v54 = vpop.permute.xlu1 %466 }
  0xa3   : > { %656 = vperm.xlu1 %2342, %v2597_v12   ;;  %v673_v12 = vsub.s32 6, %v408_v57  ;;  %v543_v8 = vmul.f32 %v2777_v20, %v2739_v54  ;;  %v544_v10 = vmul.f32 %v2779_v23, %v2739_v54  ;;  %v430_v54 = vmul.f32 %v2786_v26, %v2730_v50 }
  0xa4   : > { %v2745_v56 = vpop.permute.xlu0 %494 }
  0xa5   : > { %v674_v22 = vrot.slane %v309_v3, %v673_v12 }
  0xa6   : > { %1367 = vperm.xlu0 %2345, %v1289_v55   ;;  %v2750_v59 = vpop.permute.xlu1 %470 }
  0xa7   : > { %2343 = vset.pattern.permute.xlu1 %v2454_v5  ;;  %v2794_v29 = vrot.slane %v674_v22, %v669_v11  ;;  %v545_v21 = vmul.f32 %v2777_v20, %v2750_v59  ;;  %v546_v22 = vmul.f32 %v2779_v23, %v2750_v59  ;;  %v941_v59 = vld [vmem:[%s3259_s4] sm:$0xff] }
  0xa8   : > { %822 = vperm.xlu1 %2343, %v760_v58   ;;  %v2759_v61 = vpop.permute.xlu0 %502 }
  0xa9   : > { %v686_v36 = vmul.f32 %v2794_v29, %v2700_v39  ;;  %v1301_v39 = vld [vmem:[%s3261_s6 + $0xb8] sm:$0xff] }
  0xaa   : > { %1377 = vperm.xlu0 %2345, %v1291_v60  }
  0xab   : > { %v2764_v4 = vpop.permute.xlu1 %616 }
  0xac   : > { %398 = vperm.xlu1 %2343, %v324_v63   ;;  %v2769_v9 = vpop.permute.xlu0 %510 }
  0xae   : > { %1387 = vperm.xlu0 %2345, %v1293_v6  }
  0xb0   : > { %2344 = vset.pattern.permute.xlu1 %v2453_v2  ;;  %v768_v18 = vpop.permute.xlu1 %767  ;;  %v2775_v19 = vpop.permute.xlu0 %518 }
  0xb1   : > { %514 = vperm.xlu1 %2344, %v324_v63  }
  0xb2   : > { %1397 = vperm.xlu0 %2345, %v1295_v15  }
  0xb4   : > { %v2788_v2 = vpop.permute.xlu1 %348 }
  0xb5   : > { %v329_v30 = vpop.permute.xlu0 %328  ;;  %2346 = vset.pattern.permute.xlu1 %v2452_v1 }
  0xb6   : > { %v425_v32 = vmul.f32 %v2784_v25, %v329_v30  ;;  %v426_v33 = vmul.f32 %v2786_v26, %v329_v30  ;;  %1407 = vperm.xlu0 %2345, %v1297_v24   ;;  %660 = vperm.xlu1 %2346, %v324_v63   ;;  %v1303_v63 = vld [vmem:[%s3261_s6 + $0xc8] sm:$0xff]  ;;  %v1305_v24 = vld [vmem:[%s3261_s6 + $0xd8] sm:$0xff] }
  0xb8   : > { %v571_v1 = vadd.f32 %v539_v27, %v425_v32  ;;  %v572_v37 = vadd.f32 %v540_v31, %v426_v33  ;;  %v2808_v40 = vpop.permute.xlu1 %353  ;;  %v689_v33 = vmul.f32 %v2792_v28, %v2711_v43 }
  0xb9   : > { %v334_v41 = vpop.permute.xlu0 %333 }
  0xba   : > { %v427_v46 = vmul.f32 %v2784_v25, %v334_v41  ;;  %v428_v48 = vmul.f32 %v2786_v26, %v334_v41  ;;  %1417 = vperm.xlu0 %2345, %v1299_v34   ;;  %664 = vperm.xlu1 %2346, %v2604_v13   ;;  %v717_v51 = vadd.f32 %v685_v35, %v571_v1 }
  0xbb   : > { %v718_v57 = vadd.f32 %v686_v36, %v572_v37  ;;  %v688_v13 = vmul.f32 %v2794_v29, %v2721_v47  ;;  %v763_v47 = vld [vmem:[%s3257_s2 + $0x70] sm:$0xff]  ;;  %v576_v35 = vadd.f32 %v544_v10, %v430_v54  ;;  %v433_v54 = vmul.f32 %v2784_v25, %v2788_v2 }
  0xbc   : > { %v573_v53 = vadd.f32 %v541_v38, %v427_v46  ;;  %v574_v55 = vadd.f32 %v542_v44, %v428_v48  ;;  %v845_v7 = vadd.f32 %v768_v18, %v717_v51  ;;  %v1307_v44 = vld [vmem:[%s3261_s6 + $0xe8] sm:$0xff]  ;;  %v691_v46 = vmul.f32 %v2792_v28, %v2764_v4  ;;  %v943_v51 = vld [vmem:[%s3259_s4 + $0x10] sm:$0xff] }
  0xbd   : > { %v344_v58 = vpop.permute.xlu0 %343  ;;  %v2820_v60 = vpop.permute.xlu1 %478  ;;  %v846_v6 = vadd.f32 %v768_v18, %v718_v57  ;;  %v429_v18 = vmul.f32 %v2784_v25, %v2730_v50  ;;  %v690_v50 = vmul.f32 %v2794_v29, %v2711_v43  ;;  %v692_v43 = vmul.f32 %v2794_v29, %v2764_v4 }
  0xbe   : > { %1427 = vperm.xlu0 %2345, %v1301_v39   ;;  %2347 = vset.pattern.permute.xlu1 %v2454_v5  ;;  %v719_v0 = vadd.f32 %v687_v62, %v573_v53  ;;  %v720_v3 = vadd.f32 %v688_v13, %v574_v55  ;;  %v431_v12 = vmul.f32 %v2784_v25, %v344_v58  ;;  %v877_v32 = vmax.f32 %v845_v7, 0.0  ;;  %v1309_v62 = vld [vmem:[%s3261_s6 + $0xf8] sm:$0xff] }
  0xbf   : > { %832 = vperm.xlu1 %2347, %v762_v42   ;;  %v432_v14 = vmul.f32 %v2786_v26, %v344_v58  ;;  %v878_v30 = vmax.f32 %v846_v6, 0.0  ;;  %v575_v34 = vadd.f32 %v543_v8, %v429_v18  ;;  %v722_v39 = vadd.f32 %v690_v50, %v576_v35 }
  0xc0   : > { %v577_v36 = vadd.f32 %v545_v21, %v431_v12  ;;  %v434_v21 = vmul.f32 %v2786_v26, %v2788_v2 }
  0xc1   : > { %v773_v11 = vpop.permute.xlu0 %772  ;;  %v578_v1 = vadd.f32 %v546_v22, %v432_v14  ;;  %v721_v48 = vadd.f32 %v689_v33, %v575_v34  ;;  %v949_v14 = vld [vmem:[%s3259_s4 + $0x40] sm:$0xff]  ;;  %v549_v22 = vmul.f32 %v2777_v20, %v2820_v60  ;;  %v696_v33 = vmul.f32 %v2794_v29, %v2716_v45 }
  0xc2   : > { %v847_v15 = vadd.f32 %v773_v11, %v719_v0  ;;  %v848_v16 = vadd.f32 %v773_v11, %v720_v3  ;;  %1437 = vperm.xlu0 %2345, %v1303_v63   ;;  %v2842_v17 = vpop.permute.xlu1 %620  ;;  %v723_v53 = vadd.f32 %v691_v46, %v577_v36  ;;  %v945_v63 = vld [vmem:[%s3259_s4 + $0x20] sm:$0xff]  ;;  %v947_v11 = vld [vmem:[%s3259_s4 + $0x30] sm:$0xff] }
  0xc3   : > { %837 = vperm.xlu1 %2347, %v763_v47   ;;  %v724_v55 = vadd.f32 %v692_v43, %v578_v1  ;;  %v693_v2 = vmul.f32 %v2792_v28, %v2842_v17 }
  0xc4   : > { %v879_v27 = vmax.f32 %v847_v15, 0.0  ;;  %v880_v31 = vmax.f32 %v848_v16, 0.0  ;;  %v547_v15 = vmul.f32 %v2777_v20, %v2728_v49  ;;  %v548_v16 = vmul.f32 %v2779_v23, %v2728_v49 }
  0xc5   : > { %v359_v18 = vpop.permute.xlu0 %358  ;;  %v435_v49 = vmul.f32 %v2784_v25, %v2808_v40 }
  0xc6   : > { %1447 = vperm.xlu0 %2345, %v1305_v24   ;;  %v926_v37 = vpack.c.bf16 %v880_v31, %v878_v30  ;;  %v925_v38 = vpack.c.bf16 %v879_v27, %v877_v32  ;;  %v550_v24 = vmul.f32 %v2779_v23, %v2820_v60  ;;  %v951_v30 = vld [vmem:[%s3259_s4 + $0x50] sm:$0xff]  ;;  %v436_v31 = vmul.f32 %v2786_v26, %v2808_v40  ;;  %v953_v40 = vld [vmem:[%s3259_s4 + $0x60] sm:$0xff] }
  0xc7   : > { %v778_v41 = vpop.permute.xlu1 %777  ;;  %959 = vperm.xlu1 %2347, %v941_v59   ;;  %v694_v32 = vmul.f32 %v2794_v29, %v2842_v17  ;;  %v695_v60 = vmul.f32 %v2792_v28, %v2716_v45  ;;  %v579_v50 = vadd.f32 %v547_v15, %v433_v54  ;;  %v580_v34 = vadd.f32 %v548_v16, %v434_v21  ;;  %v955_v45 = vld [vmem:[%s3259_s4 + $0x70] sm:$0xff] }
  0xc8   : > { %1085 = vmatprep.subr.bf16.mxu0 %v926_v37  ;;  %v849_v57 = vadd.f32 %v778_v41, %v721_v48  ;;  %v850_v58 = vadd.f32 %v778_v41, %v722_v39  ;;  %v581_v35 = vadd.f32 %v549_v22, %v435_v49  ;;  %v582_v59 = vadd.f32 %v550_v24, %v436_v31 }
  0xc9   : > { %1086 = vmatpush1.bf16.msra.mxu0 %v925_v38  ;;  %v788_v1 = vpop.permute.xlu0 %787  ;;  %v725_v37 = vadd.f32 %v693_v2, %v579_v50  ;;  %v726_v38 = vadd.f32 %v694_v32, %v580_v34  ;;  %v553_v15 = vmul.f32 %v2777_v20, %v2737_v52  ;;  %v554_v16 = vmul.f32 %v2779_v23, %v2737_v52  ;;  %v1286_v2 = vld [vmem:[%s3261_s6 + $0x40] sm:$0xff] }
  0xca   : > { %1457 = vperm.xlu0 %2345, %v1307_v44   ;;  %v881_v6 = vmax.f32 %v849_v57, 0.0  ;;  %v882_v7 = vmax.f32 %v850_v58, 0.0  ;;  %v727_v44 = vadd.f32 %v695_v60, %v581_v35  ;;  %v728_v46 = vadd.f32 %v696_v33, %v582_v59  ;;  %v1278_v58 = vld [vmem:[%s3261_s6] sm:$0xff] }
  0xcb   : > { %v783_v42 = vpop.permute.xlu1 %782  ;;  %969 = vperm.xlu1 %2347, %v943_v51   ;;  %v853_v17 = vadd.f32 %v788_v1, %v725_v37  ;;  %v854_v41 = vadd.f32 %v788_v1, %v726_v38 }
  0xcc   : > { %v851_v4 = vadd.f32 %v783_v42, %v723_v53  ;;  %v852_v13 = vadd.f32 %v783_v42, %v724_v55 }
  0xcd   : > { %v885_v51 = vmax.f32 %v853_v17, 0.0  ;;  %v886_v53 = vmax.f32 %v854_v41, 0.0  ;;  %v374_v54 = vpop.permute.xlu0 %373 }
  0xce   : > { %v883_v0 = vmax.f32 %v851_v4, 0.0  ;;  %v884_v3 = vmax.f32 %v852_v13, 0.0  ;;  %1467 = vperm.xlu0 %2345, %v1309_v62   ;;  %v1280_v13 = vld [vmem:[%s3261_s6 + $0x10] sm:$0xff] }
  0xcf   : > { %v2878_v8 = vpop.permute.xlu1 %363  ;;  %979 = vperm.xlu1 %2347, %v945_v63  }
  0xd0   : > { %v928_v10 = vpack.c.bf16 %v884_v3, %v882_v7  ;;  %v927_v47 = vpack.c.bf16 %v883_v0, %v881_v6  ;;  %v1282_v0 = vld [vmem:[%s3261_s6 + $0x20] sm:$0xff]  ;;  %v437_v3 = vmul.f32 %v2784_v25, %v359_v18  ;;  %v438_v6 = vmul.f32 %v2786_v26, %v359_v18  ;;  %v1284_v18 = vld [vmem:[%s3261_s6 + $0x30] sm:$0xff] }
  0xd1   : > { %v440_v21 = vmul.f32 %v2786_v26, %v2878_v8  ;;  %v798_v33 = vpop.permute.xlu0 %797 }
  0xd2   : > { %1087 = vmatprep.subr.bf16.mxu0 %v928_v10 }
  0xd3   : > { %989 = vperm.xlu1 %2347, %v947_v11   ;;  %1088 = vmatpush1.bf16.msra.mxu0 %v927_v47  ;;  %v586_v60 = vadd.f32 %v554_v16, %v440_v21 }
  0xd4   : > { %v483_v12 = vpop.permute.xlu1 %482 }
  0xd5   : > { %v551_v7 = vmul.f32 %v2777_v20, %v483_v12  ;;  %v552_v10 = vmul.f32 %v2779_v23, %v483_v12  ;;  %v439_v12 = vmul.f32 %v2784_v25, %v2878_v8 }
  0xd7   : > { %999 = vperm.xlu1 %2347, %v949_v14   ;;  %v583_v22 = vadd.f32 %v551_v7, %v437_v3  ;;  %v584_v24 = vadd.f32 %v552_v10, %v438_v6  ;;  %v585_v32 = vadd.f32 %v553_v15, %v439_v12  ;;  %v384_v7 = vpop.permute.xlu0 %383 }
  0xd9   : > { %v629_v27 = vpop.permute.xlu1 %628 }
  0xda   : > { %v697_v11 = vmul.f32 %v2792_v28, %v629_v27  ;;  %v698_v47 = vmul.f32 %v2794_v29, %v629_v27 }
  0xdb   : > { %1009 = vperm.xlu1 %2347, %v951_v30   ;;  %v808_v21 = vpop.permute.xlu0 %807 }
  0xdc   : > { %v729_v27 = vadd.f32 %v697_v11, %v583_v22  ;;  %v730_v30 = vadd.f32 %v698_v47, %v584_v24 }
  0xdd   : > { %v633_v36 = vpop.permute.xlu1 %632 }
  0xde   : > { %v699_v49 = vmul.f32 %v2792_v28, %v633_v36  ;;  %v700_v31 = vmul.f32 %v2794_v29, %v633_v36  ;;  %v857_v50 = vadd.f32 %v798_v33, %v729_v27  ;;  %v858_v34 = vadd.f32 %v798_v33, %v730_v30 }
  0xdf   : > { %1019 = vperm.xlu1 %2347, %v953_v40   ;;  %v1288_v40 = vld [vmem:[%s3261_s6 + $0x50] sm:$0xff] }
  0xe0   : > { %v731_v8 = vadd.f32 %v699_v49, %v585_v32  ;;  %v732_v35 = vadd.f32 %v700_v31, %v586_v60  ;;  %v890_v17 = vmax.f32 %v858_v34, 0.0  ;;  %v889_v41 = vmax.f32 %v857_v50, 0.0  ;;  %v1300_v32 = vld [vmem:[%s3261_s6 + $0xb0] sm:$0xff] }
  0xe2   : > { %v793_v43 = vpop.permute.xlu1 %792 }
  0xe3   : > { %v855_v48 = vadd.f32 %v793_v43, %v727_v44  ;;  %v856_v39 = vadd.f32 %v793_v43, %v728_v46  ;;  %1029 = vperm.xlu1 %2347, %v955_v45   ;;  %v1290_v46 = vld [vmem:[%s3261_s6 + $0x60] sm:$0xff] }
  0xe5   : > { %v887_v55 = vmax.f32 %v855_v48, 0.0  ;;  %v888_v57 = vmax.f32 %v856_v39, 0.0  ;;  %v1292_v48 = vld [vmem:[%s3261_s6 + $0x70] sm:$0xff] }
  0xe6   : > { %v2922_v42 = vpop.permute.xlu1 %368 }
  0xe7   : > { %v930_v62 = vpack.c.bf16 %v888_v57, %v886_v53  ;;  %v929_v4 = vpack.c.bf16 %v887_v55, %v885_v51  ;;  %1312 = vperm.xlu1 %2347, %v1278_v58   ;;  %v1294_v55 = vld [vmem:[%s3261_s6 + $0x80] sm:$0xff]  ;;  %v557_v57 = vmul.f32 %v2777_v20, %v2745_v56  ;;  %v558_v58 = vmul.f32 %v2779_v23, %v2745_v56  ;;  %v1296_v56 = vld [vmem:[%s3261_s6 + $0x90] sm:$0xff] }
  0xe9   : > { %1089 = vmatprep.subr.bf16.mxu0 %v930_v62  ;;  %v443_v62 = vmul.f32 %v2784_v25, %v374_v54 }
  0xea   : > { %1090 = vmatpush1.bf16.msra.mxu0 %v929_v4  ;;  %v444_v4 = vmul.f32 %v2786_v26, %v374_v54 }
  0xeb   : > { %v491_v63 = vpop.permute.xlu1 %490  ;;  %1322 = vperm.xlu1 %2347, %v1280_v13   ;;  %v441_v13 = vmul.f32 %v2784_v25, %v2922_v42  ;;  %v589_v47 = vadd.f32 %v557_v57, %v443_v62 }
  0xec   : > { %v555_v51 = vmul.f32 %v2777_v20, %v491_v63  ;;  %v556_v53 = vmul.f32 %v2779_v23, %v491_v63  ;;  %v442_v63 = vmul.f32 %v2786_v26, %v2922_v42  ;;  %v590_v15 = vadd.f32 %v558_v58, %v444_v4 }
  0xee   : > { %v587_v10 = vadd.f32 %v555_v51, %v441_v13  ;;  %v588_v11 = vadd.f32 %v556_v53, %v442_v63  ;;  %v394_v51 = vpop.permute.xlu0 %393  ;;  %v447_v53 = vmul.f32 %v2784_v25, %v384_v7 }
  0xef   : > { %1332 = vperm.xlu1 %2347, %v1282_v0  }
  0xf0   : > { %v637_v14 = vpop.permute.xlu1 %636 }
  0xf1   : > { %v701_v0 = vmul.f32 %v2792_v28, %v637_v14  ;;  %v702_v3 = vmul.f32 %v2794_v29, %v637_v14  ;;  %v1298_v14 = vld [vmem:[%s3261_s6 + $0xa0] sm:$0xff] }
  0xf3   : > { %1342 = vperm.xlu1 %2347, %v1284_v18   ;;  %v733_v16 = vadd.f32 %v701_v0, %v587_v10  ;;  %v734_v54 = vadd.f32 %v702_v3, %v588_v11 }
  0xf4   : > { %v641_v52 = vpop.permute.xlu1 %640 }
  0xf5   : > { %v703_v18 = vmul.f32 %v2792_v28, %v641_v52  ;;  %v704_v42 = vmul.f32 %v2794_v29, %v641_v52  ;;  %v861_v22 = vadd.f32 %v808_v21, %v733_v16  ;;  %v862_v24 = vadd.f32 %v808_v21, %v734_v54 }
  0xf7   : > { %1352 = vperm.xlu1 %2347, %v1286_v2   ;;  %v735_v27 = vadd.f32 %v703_v18, %v589_v47  ;;  %v736_v30 = vadd.f32 %v704_v42, %v590_v15  ;;  %v894_v33 = vmax.f32 %v862_v24, 0.0  ;;  %v893_v50 = vmax.f32 %v861_v22, 0.0 }
  0xf9   : > { %v803_v59 = vpop.permute.xlu1 %802 }
  0xfa   : > { %v859_v36 = vadd.f32 %v803_v59, %v731_v8  ;;  %v860_v1 = vadd.f32 %v803_v59, %v732_v35  ;;  %v1302_v8 = vld [vmem:[%s3261_s6 + $0xc0] sm:$0xff] }
  0xfb   : > { %1362 = vperm.xlu1 %2347, %v1288_v40  }
  0xfc   : > { %v891_v37 = vmax.f32 %v859_v36, 0.0  ;;  %v892_v38 = vmax.f32 %v860_v1, 0.0  ;;  %v1304_v36 = vld [vmem:[%s3261_s6 + $0xd0] sm:$0xff] }
  0xfd   : > { %v2955_v44 = vpop.permute.xlu1 %378 }
  0xfe   : > { %v932_v45 = vpack.c.bf16 %v892_v38, %v890_v17  ;;  %v931_v43 = vpack.c.bf16 %v891_v37, %v889_v41  ;;  %v1306_v38 = vld [vmem:[%s3261_s6 + $0xe0] sm:$0xff]  ;;  %v445_v17 = vmul.f32 %v2784_v25, %v2955_v44  ;;  %v446_v41 = vmul.f32 %v2786_v26, %v2955_v44  ;;  %v1308_v44 = vld [vmem:[%s3261_s6 + $0xf0] sm:$0xff] }
  0xff   : > { %1372 = vperm.xlu1 %2347, %v1290_v46  }
 0x100   : > { %1091 = vmatprep.subr.bf16.mxu0 %v932_v45 }
 0x101   : > { %1092 = vmatpush1.bf16.msra.mxu0 %v931_v43 }
 0x102   : > { %v499_v39 = vpop.permute.xlu1 %498 }
 0x103   : > { %1382 = vperm.xlu1 %2347, %v1292_v48   ;;  %v559_v1 = vmul.f32 %v2777_v20, %v499_v39  ;;  %v560_v37 = vmul.f32 %v2779_v23, %v499_v39  ;;  %v561_v48 = vmul.f32 %v2777_v20, %v2759_v61  ;;  %v562_v39 = vmul.f32 %v2779_v23, %v2759_v61 }
 0x105   : > { %v591_v57 = vadd.f32 %v559_v1, %v445_v17  ;;  %v592_v58 = vadd.f32 %v560_v37, %v446_v41  ;;  %v593_v61 = vadd.f32 %v561_v48, %v447_v53 }
 0x107   : > { %v645_v6 = vpop.permute.xlu1 %644  ;;  %1392 = vperm.xlu1 %2347, %v1294_v55   ;;  %v448_v55 = vmul.f32 %v2786_v26, %v384_v7 }
 0x108   : > { %v705_v46 = vmul.f32 %v2792_v28, %v645_v6  ;;  %v706_v45 = vmul.f32 %v2794_v29, %v645_v6  ;;  %v818_v6 = vpop.permute.xlu0 %817 }
 0x109   : > { %v594_v3 = vadd.f32 %v562_v39, %v448_v55 }
 0x10a   : > { %v737_v62 = vadd.f32 %v705_v46, %v591_v57  ;;  %v738_v4 = vadd.f32 %v706_v45, %v592_v58 }
 0x10b   : > { %v649_v12 = vpop.permute.xlu1 %648  ;;  %1402 = vperm.xlu1 %2347, %v1296_v56  }
 0x10c   : > { %v707_v13 = vmul.f32 %v2792_v28, %v649_v12  ;;  %v708_v63 = vmul.f32 %v2794_v29, %v649_v12  ;;  %v865_v10 = vadd.f32 %v818_v6, %v737_v62  ;;  %v866_v7 = vadd.f32 %v818_v6, %v738_v4 }
 0x10e   : > { %v739_v11 = vadd.f32 %v707_v13, %v593_v61  ;;  %v740_v56 = vadd.f32 %v708_v63, %v594_v3  ;;  %v898_v42 = vmax.f32 %v866_v7, 0.0 }
 0x10f   : > { %1412 = vperm.xlu1 %2347, %v1298_v14   ;;  %v897_v14 = vmax.f32 %v865_v10, 0.0 }
 0x110   : > { %v813_v49 = vpop.permute.xlu1 %812 }
 0x111   : > { %v863_v31 = vadd.f32 %v813_v49, %v735_v27  ;;  %v864_v2 = vadd.f32 %v813_v49, %v736_v30 }
 0x113   : > { %v895_v52 = vmax.f32 %v863_v31, 0.0  ;;  %v896_v60 = vmax.f32 %v864_v2, 0.0  ;;  %1422 = vperm.xlu1 %2347, %v1300_v32  }
 0x114   : > { %v389_v34 = vpop.permute.xlu1 %388 }
 0x115   : > { %v934_v35 = vpack.c.bf16 %v896_v60, %v894_v33  ;;  %v933_v59 = vpack.c.bf16 %v895_v52, %v893_v50  ;;  %v449_v49 = vmul.f32 %v2784_v25, %v389_v34  ;;  %v450_v31 = vmul.f32 %v2786_v26, %v389_v34  ;;  %v404_v52 = vpop.permute.xlu0 %403 }
 0x116   : > { %v565_v33 = vmul.f32 %v2777_v20, %v2769_v9  ;;  %v566_v50 = vmul.f32 %v2779_v23, %v2769_v9  ;;  %v570_v34 = vmul.f32 %v2779_v23, %v2775_v19  ;;  %v455_v1 = vmul.f32 %v2784_v25, %v404_v52 }
 0x117   : > { %1093 = vmatprep.subr.bf16.mxu0 %v934_v35  ;;  %1432 = vperm.xlu1 %2347, %v1302_v8   ;;  %v456_v37 = vmul.f32 %v2786_v26, %v404_v52  ;;  %v2350_v52 = vld [vmem:[%s3258_s3 + $0x10] sm:$0xff]  }
 0x118   : > { %1094 = vmatpush1.bf16.msra.mxu0 %v933_v59  ;;  %v569_v59 = vmul.f32 %v2777_v20, %v2775_v19 }
 0x119   : > { %v507_v40 = vpop.permute.xlu1 %506  ;;  %v828_v39 = vpop.permute.xlu0 %827  ;;  %v602_v57 = vadd.f32 %v570_v34, %v456_v37 }
 0x11a   : > { %v563_v27 = vmul.f32 %v2777_v20, %v507_v40  ;;  %v564_v30 = vmul.f32 %v2779_v23, %v507_v40  ;;  %v451_v40 = vmul.f32 %v2784_v25, %v394_v51  ;;  %v601_v55 = vadd.f32 %v569_v59, %v455_v1 }
 0x11b   : > { %1442 = vperm.xlu1 %2347, %v1304_v36   ;;  %v452_v36 = vmul.f32 %v2786_v26, %v394_v51 }
 0x11c   : > { %v595_v8 = vadd.f32 %v563_v27, %v449_v49  ;;  %v596_v35 = vadd.f32 %v564_v30, %v450_v31  ;;  %v597_v19 = vadd.f32 %v565_v33, %v451_v40  ;;  %v2352_v33 = vld [vmem:[%s3258_s3 + $0x20] sm:$0xff]  }
 0x11d   : > { %v598_v48 = vadd.f32 %v566_v50, %v452_v36  ;;  %v2353_v50 = vld [vmem:[%s3258_s3 + $0x28] sm:$0xff]  }
 0x11e   : > { %v653_v43 = vpop.permute.xlu1 %652 }
 0x11f   : > { %1452 = vperm.xlu1 %2347, %v1306_v38   ;;  %v709_v2 = vmul.f32 %v2792_v28, %v653_v43  ;;  %v710_v32 = vmul.f32 %v2794_v29, %v653_v43 }
 0x121   : > { %v741_v38 = vadd.f32 %v709_v2, %v595_v8  ;;  %v742_v17 = vadd.f32 %v710_v32, %v596_v35  ;;  %v2348_v2 = vld [vmem:[%s3258_s3] sm:$0xff]   ;;  %v2349_v32 = vld [vmem:[%s3258_s3 + $0x8] sm:$0xff]   ;;  %v2354_v8 = vld [vmem:[%s3258_s3 + $0x30] sm:$0xff]  }
 0x122   : > { %v657_v0 = vpop.permute.xlu1 %656  ;;  %v2355_v35 = vld [vmem:[%s3258_s3 + $0x38] sm:$0xff]  }
 0x123   : > { %1462 = vperm.xlu1 %2347, %v1308_v44   ;;  %v711_v9 = vmul.f32 %v2792_v28, %v657_v0  ;;  %v712_v46 = vmul.f32 %v2794_v29, %v657_v0  ;;  %v869_v58 = vadd.f32 %v828_v39, %v741_v38  ;;  %v870_v44 = vadd.f32 %v828_v39, %v742_v17 }
 0x125   : > { %v743_v3 = vadd.f32 %v711_v9, %v597_v19  ;;  %v744_v6 = vadd.f32 %v712_v46, %v598_v48 }
 0x127   : > { %v823_v47 = vpop.permute.xlu1 %822 }
 0x128   : > { %v867_v15 = vadd.f32 %v823_v47, %v739_v11  ;;  %v868_v16 = vadd.f32 %v823_v47, %v740_v56  ;;  %v843_v56 = vpop.permute.xlu0 %842 }
 0x12a   : > { %v899_v54 = vmax.f32 %v867_v15, 0.0  ;;  %v900_v18 = vmax.f32 %v868_v16, 0.0  ;;  %v902_v16 = vmax.f32 %v870_v44, 0.0 }
 0x12b   : > { %v399_v21 = vpop.permute.xlu1 %398 }
 0x12c   : > { %v936_v22 = vpack.c.bf16 %v900_v18, %v898_v42  ;;  %v935_v24 = vpack.c.bf16 %v899_v54, %v897_v14  ;;  %v453_v62 = vmul.f32 %v2784_v25, %v399_v21  ;;  %v454_v4 = vmul.f32 %v2786_v26, %v399_v21  ;;  %v965_v1 = vpop.permute.xlu0 %964 }
 0x12d   : > { %v901_v25 = vmax.f32 %v869_v58, 0.0 }
 0x12e   : > { %1095 = vmatprep.subr.bf16.mxu0 %v936_v22 }
 0x12f   : > { %1096 = vmatpush1.bf16.msra.mxu0 %v935_v24 }
 0x130   : > { %v515_v12 = vpop.permute.xlu1 %514  ;;  %v975_v58 = vpop.permute.xlu0 %974 }
 0x131   : > { %v567_v51 = vmul.f32 %v2777_v20, %v515_v12  ;;  %v568_v53 = vmul.f32 %v2779_v23, %v515_v12 }
 0x133   : > { %v599_v10 = vadd.f32 %v567_v51, %v453_v62  ;;  %v600_v20 = vadd.f32 %v568_v53, %v454_v4 }
 0x135   : > { %v661_v60 = vpop.permute.xlu1 %660 }
 0x136   : > { %v713_v13 = vmul.f32 %v2792_v28, %v661_v60  ;;  %v714_v63 = vmul.f32 %v2794_v29, %v661_v60  ;;  %v2351_v60 = vld [vmem:[%s3258_s3 + $0x18] sm:$0xff]  }
 0x138   : > { %v745_v47 = vadd.f32 %v713_v13, %v599_v10  ;;  %v746_v15 = vadd.f32 %v714_v63, %v600_v20 }
 0x139   : > { %v665_v41 = vpop.permute.xlu1 %664 }
 0x13a   : > { %v715_v45 = vmul.f32 %v2792_v28, %v665_v41  ;;  %v716_v43 = vmul.f32 %v2794_v29, %v665_v41 }
 0x13c   : > { %v747_v0 = vadd.f32 %v715_v45, %v601_v55  ;;  %v748_v61 = vadd.f32 %v716_v43, %v602_v57 }
 0x13e   : > { %v833_v7 = vpop.permute.xlu1 %832  ;;  %v875_v54 = vadd.f32 %v843_v56, %v747_v0  ;;  %v876_v26 = vadd.f32 %v843_v56, %v748_v61 }
 0x13f   : > { %v871_v23 = vadd.f32 %v833_v7, %v743_v3  ;;  %v872_v11 = vadd.f32 %v833_v7, %v744_v6 }
 0x140   : > { %v908_v27 = vmax.f32 %v876_v26, 0.0  ;;  %v907_v30 = vmax.f32 %v875_v54, 0.0 }
 0x141   : > { %v903_v18 = vmax.f32 %v871_v23, 0.0  ;;  %v904_v28 = vmax.f32 %v872_v11, 0.0 }
 0x142   : > { %v838_v42 = vpop.permute.xlu1 %837 }
 0x143   : > { %v873_v29 = vadd.f32 %v838_v42, %v745_v47  ;;  %v874_v14 = vadd.f32 %v838_v42, %v746_v15  ;;  %v938_v21 = vpack.c.bf16 %v904_v28, %v902_v16  ;;  %v937_v22 = vpack.c.bf16 %v903_v18, %v901_v25  ;;  %v985_v47 = vpop.permute.xlu0 %984 }
 0x145   : > { %v905_v24 = vmax.f32 %v873_v29, 0.0  ;;  %v906_v12 = vmax.f32 %v874_v14, 0.0  ;;  %1097 = vmatprep.subr.bf16.mxu0 %v938_v21 }
 0x146   : > { %1098 = vmatpush1.bf16.msra.mxu0 %v937_v22  ;;  %v960_v59 = vpop.permute.xlu1 %959 }
 0x147   : > { %v940_v49 = vpack.c.bf16 %v908_v27, %v906_v12  ;;  %v939_v31 = vpack.c.bf16 %v907_v30, %v905_v24  ;;  %v995_v30 = vpop.permute.xlu0 %994 }
 0x149   : > { %1099 = vmatprep.subr.bf16.mxu0 %v940_v49 }
 0x14a   : > { %1100 = vmatpush1.bf16.msra.mxu0 %v939_v31  ;;  %v970_v39 = vpop.permute.xlu1 %969 }
 0x14d   : > { %1118 = vmatmul.mubr.bf16.vlgmr.msra.gmra.mrb[0].mxu0 %v2348_v2 }
 0x14e   : > { %1127 = vmatprep.mubr.bf16.mxu0 %v2454_v5  ;;  %v980_v20 = vpop.permute.xlu1 %979 }
 0x152   : > { %v990_v21 = vpop.permute.xlu1 %989 }
 0x155   : > { %1128 = vmatmul.mubr.bf16.gmra.mrb[4].mxu0 %v2349_v32 }
 0x156   : > { %1137 = vmatprep.mubr.bf16.mxu0 %v2454_v5 }
 0x15d   : > { %1138 = vmatmul.mubr.bf16.gmra.mrb[8].mxu0 %v2350_v52 }
 0x15e   : > { %1147 = vmatprep.mubr.bf16.mxu0 %v2454_v5 }
 0x165   : > { %1148 = vmatmul.mubr.bf16.gmra.mrb[12].mxu0 %v2351_v60 }
 0x166   : > { %1157 = vmatprep.mubr.bf16.mxu0 %v2454_v5 }
 0x16d   : > { %1158 = vmatmul.mubr.bf16.gmra.mrb[16].mxu0 %v2352_v33 }
 0x16e   : > { %1167 = vmatprep.mubr.bf16.mxu0 %v2454_v5 }
 0x175   : > { %1168 = vmatmul.mubr.bf16.gmra.mrb[20].mxu0 %v2353_v50 }
 0x176   : > { %1177 = vmatprep.mubr.bf16.mxu0 %v2454_v5 }
 0x17d   : > { %1178 = vmatmul.mubr.bf16.gmra.mrb[24].mxu0 %v2354_v8 }
 0x17e   : > { %1187 = vmatprep.mubr.bf16.mxu0 %v2454_v5 }
 0x185   : > { %1188 = vmatmul.mubr.bf16.gmra.mrb[28].mxu0 %v2355_v35 }
 0x186   : > { %1598 = vmatprep.mubr.bf16.mxu0 %v2454_v5 }
 0x220   : > { %v1119_v34 = vpop.f32.mrb[0].mxu0 }
 0x221   : > { %v1120_v40 = vadd.f32 %v1119_v34, %v960_v59  ;;  %v1121_v36 = vpop.f32.mrb[1].mxu0 }
 0x222   : > { %v1122_v37 = vadd.f32 %v1121_v36, %v960_v59  ;;  %v1123_v38 = vpop.f32.mrb[2].mxu0  ;;  %v1000_v59 = vpop.permute.xlu1 %999 }
 0x223   : > { %v1124_v17 = vadd.f32 %v1123_v38, %v965_v1  ;;  %v1125_v41 = vpop.f32.mrb[3].mxu0  ;;  %v1198_v46 = vmax.f32 %v1120_v40, 0.0 }
 0x224   : > { %v1126_v9 = vadd.f32 %v1125_v41, %v965_v1  ;;  %v1199_v43 = vmax.f32 %v1122_v37, 0.0  ;;  %v1005_v37 = vpop.permute.xlu0 %1004 }
 0x225   : > { %v1200_v45 = vmax.f32 %v1124_v17, 0.0 }
 0x226   : > { %v1201_v19 = vmax.f32 %v1126_v9, 0.0 }
 0x227   : > { %v1262_v48 = vpack.c.bf16 %v1200_v45, %v1198_v46 }
 0x228   : > { %v1263_v51 = vpack.c.bf16 %v1201_v19, %v1199_v43  ;;  %v1129_v53 = vpop.f32.mrb[4].mxu0 }
 0x229   : > { %v1130_v55 = vadd.f32 %v1129_v53, %v970_v39  ;;  %v1131_v57 = vpop.f32.mrb[5].mxu0 }
 0x22a   : > { %v1132_v44 = vadd.f32 %v1131_v57, %v970_v39  ;;  %v1133_v62 = vpop.f32.mrb[6].mxu0  ;;  %1566 = vmatprep.subr.bf16.mxu0 %v1263_v51  ;;  %2245 = vmatprep.subr.bf16.mxu1 %v1263_v51  ;;  %v1010_v51 = vpop.permute.xlu1 %1009 }
 0x22b   : > { %v1134_v4 = vadd.f32 %v1133_v62, %v975_v58  ;;  %v1135_v13 = vpop.f32.mrb[7].mxu0  ;;  %1567 = vmatpush1.bf16.msra.mxu0 %v1262_v48  ;;  %2253 = vmatpush1.bf16.msra.mxu1 %v1262_v48  ;;  %v1202_v0 = vmax.f32 %v1130_v55, 0.0 }
 0x22c   : > { %v1136_v63 = vadd.f32 %v1135_v13, %v975_v58  ;;  %v1203_v3 = vmax.f32 %v1132_v44, 0.0  ;;  %v1015_v44 = vpop.permute.xlu0 %1014 }
 0x22d   : > { %v1204_v61 = vmax.f32 %v1134_v4, 0.0 }
 0x22e   : > { %v1205_v6 = vmax.f32 %v1136_v63, 0.0 }
 0x22f   : > { %v1264_v10 = vpack.c.bf16 %v1204_v61, %v1202_v0 }
 0x230   : > { %v1265_v7 = vpack.c.bf16 %v1205_v6, %v1203_v3  ;;  %v1139_v23 = vpop.f32.mrb[8].mxu0 }
 0x231   : > { %v1140_v11 = vadd.f32 %v1139_v23, %v980_v20  ;;  %v1141_v56 = vpop.f32.mrb[9].mxu0 }
 0x232   : > { %v1142_v15 = vadd.f32 %v1141_v56, %v980_v20  ;;  %v1143_v16 = vpop.f32.mrb[10].mxu0  ;;  %1568 = vmatprep.subr.bf16.mxu0 %v1265_v7  ;;  %2246 = vmatprep.subr.bf16.mxu1 %v1265_v7  ;;  %v1020_v7 = vpop.permute.xlu1 %1019 }
 0x233   : > { %v1144_v25 = vadd.f32 %v1143_v16, %v985_v47  ;;  %v1145_v54 = vpop.f32.mrb[11].mxu0  ;;  %1569 = vmatpush1.bf16.msra.mxu0 %v1264_v10  ;;  %2254 = vmatpush1.bf16.msra.mxu1 %v1264_v10  ;;  %v1206_v18 = vmax.f32 %v1140_v11, 0.0 }
 0x234   : > { %v1146_v26 = vadd.f32 %v1145_v54, %v985_v47  ;;  %v1207_v42 = vmax.f32 %v1142_v15, 0.0  ;;  %v1025_v15 = vpop.permute.xlu0 %1024 }
 0x235   : > { %v1208_v28 = vmax.f32 %v1144_v25, 0.0 }
 0x236   : > { %v1209_v29 = vmax.f32 %v1146_v26, 0.0 }
 0x237   : > { %v1266_v14 = vpack.c.bf16 %v1208_v28, %v1206_v18 }
 0x238   : > { %v1267_v22 = vpack.c.bf16 %v1209_v29, %v1207_v42  ;;  %v1149_v24 = vpop.f32.mrb[12].mxu0 }
 0x239   : > { %v1150_v12 = vadd.f32 %v1149_v24, %v990_v21  ;;  %v1151_v27 = vpop.f32.mrb[13].mxu0 }
 0x23a   : > { %v1152_v49 = vadd.f32 %v1151_v27, %v990_v21  ;;  %v1153_v31 = vpop.f32.mrb[14].mxu0  ;;  %1570 = vmatprep.subr.bf16.mxu0 %v1267_v22  ;;  %2247 = vmatprep.subr.bf16.mxu1 %v1267_v22  ;;  %v1030_v22 = vpop.permute.xlu1 %1029 }
 0x23b   : > { %v1154_v2 = vadd.f32 %v1153_v31, %v995_v30  ;;  %v1155_v32 = vpop.f32.mrb[15].mxu0  ;;  %1571 = vmatpush1.bf16.msra.mxu0 %v1266_v14  ;;  %2255 = vmatpush1.bf16.msra.mxu1 %v1266_v14  ;;  %v1210_v60 = vmax.f32 %v1150_v12, 0.0 }
 0x23c   : > { %v1156_v52 = vadd.f32 %v1155_v32, %v995_v30  ;;  %v1211_v50 = vmax.f32 %v1152_v49, 0.0  ;;  %v1035_v49 = vpop.permute.xlu0 %1034 }
 0x23d   : > { %v1212_v33 = vmax.f32 %v1154_v2, 0.0 }
 0x23e   : > { %v1213_v8 = vmax.f32 %v1156_v52, 0.0 }
 0x23f   : > { %v1268_v35 = vpack.c.bf16 %v1212_v33, %v1210_v60 }
 0x240   : > { %v1269_v34 = vpack.c.bf16 %v1213_v8, %v1211_v50  ;;  %v1159_v40 = vpop.f32.mrb[16].mxu0 }
 0x241   : > { %v1160_v36 = vadd.f32 %v1159_v40, %v1000_v59  ;;  %v1161_v1 = vpop.f32.mrb[17].mxu0  ;;  %v2356_v40 = vld [vmem:[%s3260_s5] sm:$0xff]  }
 0x242   : > { %v1162_v38 = vadd.f32 %v1161_v1, %v1000_v59  ;;  %v1163_v17 = vpop.f32.mrb[18].mxu0  ;;  %1572 = vmatprep.subr.bf16.mxu0 %v1269_v34  ;;  %2248 = vmatprep.subr.bf16.mxu1 %v1269_v34  ;;  %v2358_v1 = vld [vmem:[%s3260_s5 + $0x8] sm:$0xff]  }
 0x243   : > { %v1164_v41 = vadd.f32 %v1163_v17, %v1005_v37  ;;  %v1165_v9 = vpop.f32.mrb[19].mxu0  ;;  %1573 = vmatpush1.bf16.msra.mxu0 %v1268_v35  ;;  %2256 = vmatpush1.bf16.msra.mxu1 %v1268_v35  ;;  %v1214_v45 = vmax.f32 %v1160_v36, 0.0  ;;  %v2357_v36 = vld [vmem:[%s3260_s5 + $0x20] sm:$0xff]   ;;  %v2361_v17 = vld [vmem:[%s3260_s5 + $0x30] sm:$0xff]  }
 0x244   : > { %v1166_v46 = vadd.f32 %v1165_v9, %v1005_v37  ;;  %v1215_v19 = vmax.f32 %v1162_v38, 0.0  ;;  %v2359_v37 = vld [vmem:[%s3260_s5 + $0x28] sm:$0xff]   ;;  %v2360_v38 = vld [vmem:[%s3260_s5 + $0x10] sm:$0xff]   ;;  %v2363_v9 = vld [vmem:[%s3260_s5 + $0x38] sm:$0xff]  }
 0x245   : > { %v1216_v43 = vmax.f32 %v1164_v41, 0.0  ;;  %v2362_v41 = vld [vmem:[%s3260_s5 + $0x18] sm:$0xff]  }
 0x246   : > { %v1217_v48 = vmax.f32 %v1166_v46, 0.0  ;;  %v2364_v46 = vld [vmem:[%s3260_s5 + $0x40] sm:$0xff]  }
 0x247   : > { %v1270_v39 = vpack.c.bf16 %v1216_v43, %v1214_v45  ;;  %v2365_v45 = vld [vmem:[%s3260_s5 + $0x48] sm:$0xff]   ;;  %v2366_v43 = vld [vmem:[%s3260_s5 + $0x50] sm:$0xff]  }
 0x248   : > { %v1271_v53 = vpack.c.bf16 %v1217_v48, %v1215_v19  ;;  %v1169_v55 = vpop.f32.mrb[20].mxu0  ;;  %v2367_v19 = vld [vmem:[%s3260_s5 + $0x58] sm:$0xff]   ;;  %v2368_v48 = vld [vmem:[%s3260_s5 + $0x60] sm:$0xff]  }
 0x249   : > { %v1170_v57 = vadd.f32 %v1169_v55, %v1010_v51  ;;  %v1171_v58 = vpop.f32.mrb[21].mxu0  ;;  %v1318_v55 = vpop.permute.xlu0 %1317 }
 0x24a   : > { %v1172_v62 = vadd.f32 %v1171_v58, %v1010_v51  ;;  %v1173_v4 = vpop.f32.mrb[22].mxu0  ;;  %1574 = vmatprep.subr.bf16.mxu0 %v1271_v53  ;;  %2249 = vmatprep.subr.bf16.mxu1 %v1271_v53  ;;  %v2370_v51 = vld [vmem:[%s3260_s5 + $0x70] sm:$0xff]   ;;  %v2371_v53 = vld [vmem:[%s3260_s5 + $0x78] sm:$0xff]  }
 0x24b   : > { %v1174_v13 = vadd.f32 %v1173_v4, %v1015_v44  ;;  %v1175_v63 = vpop.f32.mrb[23].mxu0  ;;  %1575 = vmatpush1.bf16.msra.mxu0 %v1270_v39  ;;  %2257 = vmatpush1.bf16.msra.mxu1 %v1270_v39  ;;  %v1218_v61 = vmax.f32 %v1170_v57, 0.0  ;;  %v2369_v39 = vld [vmem:[%s3260_s5 + $0x68] sm:$0xff]   ;;  %v1313_v57 = vpop.permute.xlu1 %1312 }
 0x24c   : > { %v1176_v0 = vadd.f32 %v1175_v63, %v1015_v44  ;;  %v1219_v6 = vmax.f32 %v1172_v62, 0.0 }
 0x24d   : > { %v1220_v3 = vmax.f32 %v1174_v13, 0.0  ;;  %v3141_v58 = vpop.permute.xlu0 %1327 }
 0x24e   : > { %v1221_v10 = vmax.f32 %v1176_v0, 0.0 }
 0x24f   : > { %v1272_v20 = vpack.c.bf16 %v1220_v3, %v1218_v61  ;;  %v1323_v44 = vpop.permute.xlu1 %1322 }
 0x250   : > { %v1273_v23 = vpack.c.bf16 %v1221_v10, %v1219_v6  ;;  %v1179_v11 = vpop.f32.mrb[24].mxu0 }
 0x251   : > { %v1180_v56 = vadd.f32 %v1179_v11, %v1020_v7  ;;  %v1181_v47 = vpop.f32.mrb[25].mxu0  ;;  %v3143_v62 = vpop.permute.xlu0 %1337 }
 0x252   : > { %v1182_v16 = vadd.f32 %v1181_v47, %v1020_v7  ;;  %v1183_v25 = vpop.f32.mrb[26].mxu0  ;;  %1576 = vmatprep.subr.bf16.mxu0 %v1273_v23  ;;  %2250 = vmatprep.subr.bf16.mxu1 %v1273_v23 }
 0x253   : > { %v1184_v54 = vadd.f32 %v1183_v25, %v1025_v15  ;;  %v1185_v26 = vpop.f32.mrb[27].mxu0  ;;  %1577 = vmatpush1.bf16.msra.mxu0 %v1272_v20  ;;  %2258 = vmatpush1.bf16.msra.mxu1 %v1272_v20  ;;  %v1222_v28 = vmax.f32 %v1180_v56, 0.0  ;;  %v3145_v4 = vpop.permute.xlu1 %1332 }
 0x254   : > { %v1186_v18 = vadd.f32 %v1185_v26, %v1025_v15  ;;  %v1223_v29 = vmax.f32 %v1182_v16, 0.0 }
 0x255   : > { %v1224_v42 = vmax.f32 %v1184_v54, 0.0  ;;  %v3147_v13 = vpop.permute.xlu0 %1347 }
 0x256   : > { %v1225_v14 = vmax.f32 %v1186_v18, 0.0 }
 0x257   : > { %v1274_v21 = vpack.c.bf16 %v1224_v42, %v1222_v28  ;;  %v3149_v63 = vpop.permute.xlu1 %1342 }
 0x258   : > { %v1275_v24 = vpack.c.bf16 %v1225_v14, %v1223_v29  ;;  %v1189_v12 = vpop.f32.mrb[28].mxu0 }
 0x259   : > { %v1190_v27 = vadd.f32 %v1189_v12, %v1030_v22  ;;  %v1191_v30 = vpop.f32.mrb[29].mxu0 }
 0x25a   : > { %v1192_v31 = vadd.f32 %v1191_v30, %v1030_v22  ;;  %v1193_v2 = vpop.f32.mrb[30].mxu0  ;;  %1578 = vmatprep.subr.bf16.mxu0 %v1275_v24  ;;  %2251 = vmatprep.subr.bf16.mxu1 %v1275_v24 }
 0x25b   : > { %v1194_v32 = vadd.f32 %v1193_v2, %v1035_v49  ;;  %v1195_v52 = vpop.f32.mrb[31].mxu0  ;;  %1579 = vmatpush1.bf16.msra.mxu0 %v1274_v21  ;;  %2259 = vmatpush1.bf16.msra.mxu1 %v1274_v21  ;;  %v1226_v33 = vmax.f32 %v1190_v27, 0.0  ;;  %v1353_v0 = vpop.permute.xlu1 %1352 }
 0x25c   : > { %v1196_v60 = vadd.f32 %v1195_v52, %v1035_v49  ;;  %v1227_v8 = vmax.f32 %v1192_v31, 0.0 }
 0x25d   : > { %v1228_v50 = vmax.f32 %v1194_v32, 0.0 }
 0x25e   : > { %v1229_v35 = vmax.f32 %v1196_v60, 0.0 }
 0x25f   : > { %v1276_v59 = vpack.c.bf16 %v1228_v50, %v1226_v33  ;;  %v1363_v31 = vpop.permute.xlu1 %1362 }
 0x260   : > { %v1277_v34 = vpack.c.bf16 %v1229_v35, %v1227_v8 }
 0x262   : > { %1580 = vmatprep.subr.bf16.mxu0 %v1277_v34  ;;  %2252 = vmatprep.subr.bf16.mxu1 %v1277_v34 }
 0x263   : > { %1581 = vmatpush1.bf16.msra.mxu0 %v1276_v59  ;;  %2260 = vmatpush1.bf16.msra.mxu1 %v1276_v59 }
 0x266   : > { %1599 = vmatmul.mubr.bf16.vlgmr.msra.gmra.mrb[32].mxu0 %v2356_v40  ;;  %1639 = vmatmul.mubr.bf16.vlgmr.msra.gmra.mrb[0].mxu1 %v2357_v36 }
 0x267   : > { %1608 = vmatprep.mubr.bf16.mxu0 %v2454_v5  ;;  %1648 = vmatprep.mubr.bf16.mxu1 %v2454_v5 }
 0x26e   : > { %1609 = vmatmul.mubr.bf16.gmra.mrb[36].mxu0 %v2358_v1  ;;  %1649 = vmatmul.mubr.bf16.gmra.mrb[4].mxu1 %v2359_v37 }
 0x26f   : > { %1618 = vmatprep.mubr.bf16.mxu0 %v2454_v5  ;;  %1658 = vmatprep.mubr.bf16.mxu1 %v2454_v5 }
 0x276   : > { %1619 = vmatmul.mubr.bf16.gmra.mrb[40].mxu0 %v2360_v38  ;;  %1659 = vmatmul.mubr.bf16.gmra.mrb[8].mxu1 %v2361_v17 }
 0x277   : > { %1628 = vmatprep.mubr.bf16.mxu0 %v2454_v5  ;;  %1668 = vmatprep.mubr.bf16.mxu1 %v2454_v5 }
 0x27e   : > { %1629 = vmatmul.mubr.bf16.gmra.mrb[44].mxu0 %v2362_v41  ;;  %1669 = vmatmul.mubr.bf16.gmra.mrb[12].mxu1 %v2363_v9 }
 0x27f   : > { %1678 = vmatprep.mubr.bf16.mxu1 %v2454_v5 }
 0x286   : > { %1679 = vmatmul.mubr.bf16.gmra.mrb[16].mxu1 %v2364_v46 }
 0x287   : > { %1688 = vmatprep.mubr.bf16.mxu1 %v2454_v5 }
 0x28e   : > { %1689 = vmatmul.mubr.bf16.gmra.mrb[20].mxu1 %v2365_v45 }
 0x28f   : > { %1698 = vmatprep.mubr.bf16.mxu1 %v2454_v5 }
 0x296   : > { %1699 = vmatmul.mubr.bf16.gmra.mrb[24].mxu1 %v2366_v43 }
 0x297   : > { %1708 = vmatprep.mubr.bf16.mxu1 %v2454_v5 }
 0x29e   : > { %1709 = vmatmul.mubr.bf16.gmra.mrb[28].mxu1 %v2367_v19 }
 0x29f   : > { %1718 = vmatprep.mubr.bf16.mxu1 %v2454_v5 }
 0x2a6   : > { %1719 = vmatmul.mubr.bf16.gmra.mrb[32].mxu1 %v2368_v48 }
 0x2a7   : > { %1728 = vmatprep.mubr.bf16.mxu1 %v2454_v5 }
 0x2ae   : > { %1729 = vmatmul.mubr.bf16.gmra.mrb[36].mxu1 %v2369_v39 }
 0x2af   : > { %1738 = vmatprep.mubr.bf16.mxu1 %v2454_v5 }
 0x2b6   : > { %1739 = vmatmul.mubr.bf16.gmra.mrb[40].mxu1 %v2370_v51 }
 0x2b7   : > { %1748 = vmatprep.mubr.bf16.mxu1 %v2454_v5  ;;  %v1358_v5 = vpop.permute.xlu0 %1357 }
 0x2bb   : > { %v1368_v49 = vpop.permute.xlu0 %1367 }
 0x2be   : > { %1749 = vmatmul.mubr.bf16.gmra.mrb[44].mxu1 %v2371_v53 }
 0x339   : > { %v1600_v61 = vpop.f32.mrb[32].mxu0  ;;  %v1640_v3 = vpop.f32.mrb[0].mxu1 }
 0x33a   : > { %v1601_v6 = vadd.f32 %v1600_v61, %v1313_v57  ;;  %v1641_v10 = vadd.f32 %v1640_v3, %v1353_v0  ;;  %v1602_v20 = vpop.f32.mrb[33].mxu0  ;;  %v1642_v7 = vpop.f32.mrb[1].mxu1 }
 0x33b   : > { %v1603_v23 = vadd.f32 %v1602_v20, %v1313_v57  ;;  %v1643_v11 = vadd.f32 %v1642_v7, %v1353_v0  ;;  %v1604_v56 = vpop.f32.mrb[34].mxu0  ;;  %v1644_v47 = vpop.f32.mrb[2].mxu1 }
 0x33c   : > { %v1759_v15 = vmax.f32 %v1601_v6, 0.0  ;;  %v1775_v16 = vmax.f32 %v1641_v10, 0.0  ;;  %v1605_v25 = vadd.f32 %v1604_v56, %v1318_v55  ;;  %v1645_v54 = vadd.f32 %v1644_v47, %v1358_v5  ;;  %v1606_v26 = vpop.f32.mrb[35].mxu0  ;;  %v1646_v18 = vpop.f32.mrb[3].mxu1 }
 0x33d   : > { %v1760_v28 = vmax.f32 %v1603_v23, 0.0  ;;  %v1776_v42 = vmax.f32 %v1643_v11, 0.0  ;;  %v1607_v29 = vadd.f32 %v1606_v26, %v1318_v55  ;;  %v1647_v14 = vadd.f32 %v1646_v18, %v1358_v5  ;;  %v1373_v5 = vpop.permute.xlu1 %1372 }
 0x33e   : > { %v1761_v21 = vmax.f32 %v1605_v25, 0.0  ;;  %v1777_v22 = vmax.f32 %v1645_v54, 0.0 }
 0x33f   : > { %v2212_v24 = vpack.c.bf16 %v1760_v28, %v1759_v15  ;;  %v2220_v12 = vpack.c.bf16 %v1776_v42, %v1775_v16  ;;  %v1762_v27 = vmax.f32 %v1607_v29, 0.0  ;;  %v1778_v30 = vmax.f32 %v1647_v14, 0.0 }
 0x341   : > { %2015 = vst [vmem:[%s3154_s22] sm:$0xff] %v2212_v24  ;;  %2023 = vst [vmem:[%s3154_s22 + $0x40] sm:$0xff] %v2220_v12  ;;  %v2213_v2 = vpack.c.bf16 %v1762_v27, %v1761_v21  ;;  %v2221_v32 = vpack.c.bf16 %v1778_v30, %v1777_v22  ;;  %v1610_v52 = vpop.f32.mrb[36].mxu0  ;;  %v1650_v60 = vpop.f32.mrb[4].mxu1 }
 0x342   : > { %v1611_v33 = vadd.f32 %v1610_v52, %v1323_v44  ;;  %v1651_v50 = vadd.f32 %v1650_v60, %v1363_v31  ;;  %v1612_v8 = vpop.f32.mrb[37].mxu0  ;;  %v1652_v35 = vpop.f32.mrb[5].mxu1 }
 0x343   : > { %2016 = vst [vmem:[%s3154_s22 + $0x8] sm:$0xff] %v2213_v2  ;;  %2024 = vst [vmem:[%s3154_s22 + $0x48] sm:$0xff] %v2221_v32  ;;  %v1613_v59 = vadd.f32 %v1612_v8, %v1323_v44  ;;  %v1653_v34 = vadd.f32 %v1652_v35, %v1363_v31  ;;  %v1614_v40 = vpop.f32.mrb[38].mxu0  ;;  %v1654_v36 = vpop.f32.mrb[6].mxu1 }
 0x344   : > { %v1763_v1 = vmax.f32 %v1611_v33, 0.0  ;;  %v1779_v37 = vmax.f32 %v1651_v50, 0.0  ;;  %v1615_v38 = vadd.f32 %v1614_v40, %v3141_v58  ;;  %v1655_v17 = vadd.f32 %v1654_v36, %v1368_v49  ;;  %v1616_v41 = vpop.f32.mrb[39].mxu0  ;;  %v1656_v9 = vpop.f32.mrb[7].mxu1 }
 0x345   : > { %v1764_v46 = vmax.f32 %v1613_v59, 0.0  ;;  %v1780_v45 = vmax.f32 %v1653_v34, 0.0  ;;  %v1617_v43 = vadd.f32 %v1616_v41, %v3141_v58  ;;  %v1657_v19 = vadd.f32 %v1656_v9, %v1368_v49  ;;  %v1378_v44 = vpop.permute.xlu0 %1377  ;;  %v1383_v49 = vpop.permute.xlu1 %1382 }
 0x346   : > { %v1765_v48 = vmax.f32 %v1615_v38, 0.0  ;;  %v1781_v39 = vmax.f32 %v1655_v17, 0.0 }
 0x347   : > { %v2214_v51 = vpack.c.bf16 %v1764_v46, %v1763_v1  ;;  %v2222_v53 = vpack.c.bf16 %v1780_v45, %v1779_v37  ;;  %v1766_v55 = vmax.f32 %v1617_v43, 0.0  ;;  %v1782_v57 = vmax.f32 %v1657_v19, 0.0 }
 0x349   : > { %2017 = vst [vmem:[%s3154_s22 + $0x10] sm:$0xff] %v2214_v51  ;;  %2025 = vst [vmem:[%s3154_s22 + $0x50] sm:$0xff] %v2222_v53  ;;  %v2215_v0 = vpack.c.bf16 %v1766_v55, %v1765_v48  ;;  %v2223_v61 = vpack.c.bf16 %v1782_v57, %v1781_v39  ;;  %v1620_v3 = vpop.f32.mrb[40].mxu0  ;;  %v1660_v6 = vpop.f32.mrb[8].mxu1 }
 0x34a   : > { %v1621_v10 = vadd.f32 %v1620_v3, %v3145_v4  ;;  %v1661_v58 = vadd.f32 %v1660_v6, %v1373_v5  ;;  %v1622_v20 = vpop.f32.mrb[41].mxu0  ;;  %v1662_v7 = vpop.f32.mrb[9].mxu1 }
 0x34b   : > { %2018 = vst [vmem:[%s3154_s22 + $0x18] sm:$0xff] %v2215_v0  ;;  %2026 = vst [vmem:[%s3154_s22 + $0x58] sm:$0xff] %v2223_v61  ;;  %v1623_v23 = vadd.f32 %v1622_v20, %v3145_v4  ;;  %v1663_v11 = vadd.f32 %v1662_v7, %v1373_v5  ;;  %v1624_v56 = vpop.f32.mrb[42].mxu0  ;;  %v1664_v47 = vpop.f32.mrb[10].mxu1 }
 0x34c   : > { %v1767_v15 = vmax.f32 %v1621_v10, 0.0  ;;  %v1783_v16 = vmax.f32 %v1661_v58, 0.0  ;;  %v1625_v25 = vadd.f32 %v1624_v56, %v3143_v62  ;;  %v1665_v54 = vadd.f32 %v1664_v47, %v1378_v44  ;;  %v1626_v26 = vpop.f32.mrb[43].mxu0  ;;  %v1666_v18 = vpop.f32.mrb[11].mxu1 }
 0x34d   : > { %v1768_v28 = vmax.f32 %v1623_v23, 0.0  ;;  %v1784_v42 = vmax.f32 %v1663_v11, 0.0  ;;  %v1627_v29 = vadd.f32 %v1626_v26, %v3143_v62  ;;  %v1667_v14 = vadd.f32 %v1666_v18, %v1378_v44  ;;  %v1388_v30 = vpop.permute.xlu0 %1387  ;;  %v1393_v53 = vpop.permute.xlu1 %1392 }
 0x34e   : > { %v1769_v21 = vmax.f32 %v1625_v25, 0.0  ;;  %v1785_v22 = vmax.f32 %v1665_v54, 0.0 }
 0x34f   : > { %v2216_v4 = vpack.c.bf16 %v1768_v28, %v1767_v15  ;;  %v2224_v24 = vpack.c.bf16 %v1784_v42, %v1783_v16  ;;  %v1770_v12 = vmax.f32 %v1627_v29, 0.0  ;;  %v1786_v27 = vmax.f32 %v1667_v14, 0.0 }
 0x351   : > { %2019 = vst [vmem:[%s3154_s22 + $0x20] sm:$0xff] %v2216_v4  ;;  %2027 = vst [vmem:[%s3154_s22 + $0x60] sm:$0xff] %v2224_v24  ;;  %v2217_v31 = vpack.c.bf16 %v1770_v12, %v1769_v21  ;;  %v2225_v2 = vpack.c.bf16 %v1786_v27, %v1785_v22  ;;  %v1630_v32 = vpop.f32.mrb[44].mxu0  ;;  %v1670_v52 = vpop.f32.mrb[12].mxu1 }
 0x352   : > { %v1631_v60 = vadd.f32 %v1630_v32, %v3149_v63  ;;  %v1671_v62 = vadd.f32 %v1670_v52, %v1383_v49  ;;  %v1632_v33 = vpop.f32.mrb[45].mxu0  ;;  %v1672_v50 = vpop.f32.mrb[13].mxu1 }
 0x353   : > { %2020 = vst [vmem:[%s3154_s22 + $0x28] sm:$0xff] %v2217_v31  ;;  %2028 = vst [vmem:[%s3154_s22 + $0x68] sm:$0xff] %v2225_v2  ;;  %v1633_v8 = vadd.f32 %v1632_v33, %v3149_v63  ;;  %v1673_v35 = vadd.f32 %v1672_v50, %v1383_v49  ;;  %v1634_v59 = vpop.f32.mrb[46].mxu0  ;;  %v1674_v34 = vpop.f32.mrb[14].mxu1 }
 0x354   : > { %v1771_v40 = vmax.f32 %v1631_v60, 0.0  ;;  %v1787_v36 = vmax.f32 %v1671_v62, 0.0  ;;  %v1635_v1 = vadd.f32 %v1634_v59, %v3147_v13  ;;  %v1675_v37 = vadd.f32 %v1674_v34, %v1388_v30  ;;  %v1636_v38 = vpop.f32.mrb[47].mxu0  ;;  %v1676_v17 = vpop.f32.mrb[15].mxu1 }
 0x355   : > { %v1772_v41 = vmax.f32 %v1633_v8, 0.0  ;;  %v1788_v9 = vmax.f32 %v1673_v35, 0.0  ;;  %v1637_v46 = vadd.f32 %v1636_v38, %v3147_v13  ;;  %v1677_v45 = vadd.f32 %v1676_v17, %v1388_v30  ;;  %v1398_v61 = vpop.permute.xlu0 %1397  ;;  %v1403_v47 = vpop.permute.xlu1 %1402 }
 0x356   : > { %v1773_v43 = vmax.f32 %v1635_v1, 0.0  ;;  %v1789_v63 = vmax.f32 %v1675_v37, 0.0 }
 0x357   : > { %v2218_v19 = vpack.c.bf16 %v1772_v41, %v1771_v40  ;;  %v2226_v48 = vpack.c.bf16 %v1788_v9, %v1787_v36  ;;  %v1774_v39 = vmax.f32 %v1637_v46, 0.0  ;;  %v1790_v51 = vmax.f32 %v1677_v45, 0.0 }
 0x359   : > { %2021 = vst [vmem:[%s3154_s22 + $0x30] sm:$0xff] %v2218_v19  ;;  %2029 = vst [vmem:[%s3154_s22 + $0x70] sm:$0xff] %v2226_v48  ;;  %v2219_v55 = vpack.c.bf16 %v1774_v39, %v1773_v43  ;;  %v2227_v57 = vpack.c.bf16 %v1790_v51, %v1789_v63  ;;  %v1680_v44 = vpop.f32.mrb[16].mxu1  ;;  %v1408_v26 = vpop.permute.xlu0 %1407 }
 0x35a   : > { %v1681_v5 = vadd.f32 %v1680_v44, %v1393_v53  ;;  %v1682_v0 = vpop.f32.mrb[17].mxu1  ;;  %v1413_v27 = vpop.permute.xlu1 %1412 }
 0x35b   : > { %2022 = vst [vmem:[%s3154_s22 + $0x38] sm:$0xff] %v2219_v55  ;;  %2030 = vst [vmem:[%s3154_s22 + $0x78] sm:$0xff] %v2227_v57  ;;  %v1683_v13 = vadd.f32 %v1682_v0, %v1393_v53  ;;  %v1684_v3 = vpop.f32.mrb[18].mxu1 }
 0x35c   : > { %v1791_v6 = vmax.f32 %v1681_v5, 0.0  ;;  %v1685_v10 = vadd.f32 %v1684_v3, %v1398_v61  ;;  %v1686_v58 = vpop.f32.mrb[19].mxu1 }
 0x35d   : > { %v1792_v20 = vmax.f32 %v1683_v13, 0.0  ;;  %v1687_v7 = vadd.f32 %v1686_v58, %v1398_v61  ;;  %v1418_v32 = vpop.permute.xlu0 %1417 }
 0x35e   : > { %v1793_v23 = vmax.f32 %v1685_v10, 0.0  ;;  %v1423_v36 = vpop.permute.xlu1 %1422 }
 0x35f   : > { %v2228_v11 = vpack.c.bf16 %v1792_v20, %v1791_v6  ;;  %v1794_v56 = vmax.f32 %v1687_v7, 0.0 }
 0x361   : > { %2031 = vst [vmem:[%s3154_s22 + $0x80] sm:$0xff] %v2228_v11  ;;  %v2229_v15 = vpack.c.bf16 %v1794_v56, %v1793_v23  ;;  %v1690_v16 = vpop.f32.mrb[20].mxu1  ;;  %v1428_v41 = vpop.permute.xlu0 %1427 }
 0x362   : > { %v1691_v25 = vadd.f32 %v1690_v16, %v1403_v47  ;;  %v1692_v54 = vpop.f32.mrb[21].mxu1  ;;  %v1433_v55 = vpop.permute.xlu1 %1432 }
 0x363   : > { %2032 = vst [vmem:[%s3154_s22 + $0x88] sm:$0xff] %v2229_v15  ;;  %v1693_v18 = vadd.f32 %v1692_v54, %v1403_v47  ;;  %v1694_v28 = vpop.f32.mrb[22].mxu1 }
 0x364   : > { %v1795_v42 = vmax.f32 %v1691_v25, 0.0  ;;  %v1695_v29 = vadd.f32 %v1694_v28, %v1408_v26  ;;  %v1696_v14 = vpop.f32.mrb[23].mxu1 }
 0x365   : > { %v1796_v21 = vmax.f32 %v1693_v18, 0.0  ;;  %v1697_v22 = vadd.f32 %v1696_v14, %v1408_v26  ;;  %v1438_v61 = vpop.permute.xlu0 %1437 }
 0x366   : > { %v1797_v4 = vmax.f32 %v1695_v29, 0.0  ;;  %v1443_v47 = vpop.permute.xlu1 %1442 }
 0x367   : > { %v2230_v24 = vpack.c.bf16 %v1796_v21, %v1795_v42  ;;  %v1798_v12 = vmax.f32 %v1697_v22, 0.0 }
 0x369   : > { %2033 = vst [vmem:[%s3154_s22 + $0x90] sm:$0xff] %v2230_v24  ;;  %v2231_v30 = vpack.c.bf16 %v1798_v12, %v1797_v4  ;;  %v1700_v49 = vpop.f32.mrb[24].mxu1  ;;  %v1448_v26 = vpop.permute.xlu0 %1447 }
 0x36a   : > { %v1701_v31 = vadd.f32 %v1700_v49, %v1413_v27  ;;  %v1702_v2 = vpop.f32.mrb[25].mxu1 }
 0x36b   : > { %2034 = vst [vmem:[%s3154_s22 + $0x98] sm:$0xff] %v2231_v30  ;;  %v1703_v52 = vadd.f32 %v1702_v2, %v1413_v27  ;;  %v1704_v60 = vpop.f32.mrb[26].mxu1  ;;  %v1453_v27 = vpop.permute.xlu1 %1452 }
 0x36c   : > { %v1799_v62 = vmax.f32 %v1701_v31, 0.0  ;;  %v1705_v33 = vadd.f32 %v1704_v60, %v1418_v32  ;;  %v1706_v50 = vpop.f32.mrb[27].mxu1 }
 0x36d   : > { %v1800_v8 = vmax.f32 %v1703_v52, 0.0  ;;  %v1707_v35 = vadd.f32 %v1706_v50, %v1418_v32  ;;  %v1458_v32 = vpop.permute.xlu0 %1457 }
 0x36e   : > { %v1801_v59 = vmax.f32 %v1705_v33, 0.0 }
 0x36f   : > { %v2232_v34 = vpack.c.bf16 %v1800_v8, %v1799_v62  ;;  %v1802_v40 = vmax.f32 %v1707_v35, 0.0 }
 0x371   : > { %2035 = vst [vmem:[%s3154_s22 + $0xa0] sm:$0xff] %v2232_v34  ;;  %v2233_v1 = vpack.c.bf16 %v1802_v40, %v1801_v59  ;;  %v1710_v37 = vpop.f32.mrb[28].mxu1 }
 0x372   : > { %v1711_v38 = vadd.f32 %v1710_v37, %v1423_v36  ;;  %v1712_v17 = vpop.f32.mrb[29].mxu1 }
 0x373   : > { %2036 = vst [vmem:[%s3154_s22 + $0xa8] sm:$0xff] %v2233_v1  ;;  %v1713_v9 = vadd.f32 %v1712_v17, %v1423_v36  ;;  %v1714_v46 = vpop.f32.mrb[30].mxu1  ;;  %v1463_v36 = vpop.permute.xlu1 %1462 }
 0x374   : > { %v1803_v45 = vmax.f32 %v1711_v38, 0.0  ;;  %v1715_v43 = vadd.f32 %v1714_v46, %v1428_v41  ;;  %v1716_v63 = vpop.f32.mrb[31].mxu1 }
 0x375   : > { %v1804_v19 = vmax.f32 %v1713_v9, 0.0  ;;  %v1717_v48 = vadd.f32 %v1716_v63, %v1428_v41  ;;  %v1468_v41 = vpop.permute.xlu0 %1467 }
 0x376   : > { %v1805_v39 = vmax.f32 %v1715_v43, 0.0 }
 0x377   : > { %v2234_v51 = vpack.c.bf16 %v1804_v19, %v1803_v45  ;;  %v1806_v53 = vmax.f32 %v1717_v48, 0.0 }
 0x379   : > { %2037 = vst [vmem:[%s3154_s22 + $0xb0] sm:$0xff] %v2234_v51  ;;  %v2235_v57 = vpack.c.bf16 %v1806_v53, %v1805_v39  ;;  %v1720_v44 = vpop.f32.mrb[32].mxu1 }
 0x37a   : > { %v1721_v5 = vadd.f32 %v1720_v44, %v1433_v55  ;;  %v1722_v0 = vpop.f32.mrb[33].mxu1 }
 0x37b   : > { %2038 = vst [vmem:[%s3154_s22 + $0xb8] sm:$0xff] %v2235_v57  ;;  %v1723_v13 = vadd.f32 %v1722_v0, %v1433_v55  ;;  %v1724_v3 = vpop.f32.mrb[34].mxu1 }
 0x37c   : > { %v1807_v6 = vmax.f32 %v1721_v5, 0.0  ;;  %v1725_v10 = vadd.f32 %v1724_v3, %v1438_v61  ;;  %v1726_v58 = vpop.f32.mrb[35].mxu1 }
 0x37d   : > { %v1808_v20 = vmax.f32 %v1723_v13, 0.0  ;;  %v1727_v7 = vadd.f32 %v1726_v58, %v1438_v61 }
 0x37e   : > { %v1809_v23 = vmax.f32 %v1725_v10, 0.0 }
 0x37f   : > { %v2236_v11 = vpack.c.bf16 %v1808_v20, %v1807_v6  ;;  %v1810_v56 = vmax.f32 %v1727_v7, 0.0 }
 0x381   : > { %2039 = vst [vmem:[%s3154_s22 + $0xc0] sm:$0xff] %v2236_v11  ;;  %v2237_v15 = vpack.c.bf16 %v1810_v56, %v1809_v23  ;;  %v1730_v16 = vpop.f32.mrb[36].mxu1 }
 0x382   : > { %v1731_v25 = vadd.f32 %v1730_v16, %v1443_v47  ;;  %v1732_v54 = vpop.f32.mrb[37].mxu1 }
 0x383   : > { %2040 = vst [vmem:[%s3154_s22 + $0xc8] sm:$0xff] %v2237_v15  ;;  %v1733_v18 = vadd.f32 %v1732_v54, %v1443_v47  ;;  %v1734_v28 = vpop.f32.mrb[38].mxu1 }
 0x384   : > { %v1811_v42 = vmax.f32 %v1731_v25, 0.0  ;;  %v1735_v29 = vadd.f32 %v1734_v28, %v1448_v26  ;;  %v1736_v14 = vpop.f32.mrb[39].mxu1 }
 0x385   : > { %v1812_v21 = vmax.f32 %v1733_v18, 0.0  ;;  %v1737_v22 = vadd.f32 %v1736_v14, %v1448_v26 }
 0x386   : > { %v1813_v4 = vmax.f32 %v1735_v29, 0.0 }
 0x387   : > { %v2238_v24 = vpack.c.bf16 %v1812_v21, %v1811_v42  ;;  %v1814_v12 = vmax.f32 %v1737_v22, 0.0 }
 0x389   : > { %2041 = vst [vmem:[%s3154_s22 + $0xd0] sm:$0xff] %v2238_v24  ;;  %v2239_v30 = vpack.c.bf16 %v1814_v12, %v1813_v4  ;;  %v1740_v49 = vpop.f32.mrb[40].mxu1 }
 0x38a   : > { %v1741_v31 = vadd.f32 %v1740_v49, %v1453_v27  ;;  %v1742_v2 = vpop.f32.mrb[41].mxu1 }
 0x38b   : > { %2042 = vst [vmem:[%s3154_s22 + $0xd8] sm:$0xff] %v2239_v30  ;;  %v1743_v52 = vadd.f32 %v1742_v2, %v1453_v27  ;;  %v1744_v60 = vpop.f32.mrb[42].mxu1 }
 0x38c   : > { %v1815_v62 = vmax.f32 %v1741_v31, 0.0  ;;  %v1745_v33 = vadd.f32 %v1744_v60, %v1458_v32  ;;  %v1746_v50 = vpop.f32.mrb[43].mxu1 }
 0x38d   : > { %v1816_v8 = vmax.f32 %v1743_v52, 0.0  ;;  %v1747_v35 = vadd.f32 %v1746_v50, %v1458_v32 }
 0x38e   : > { %v1817_v59 = vmax.f32 %v1745_v33, 0.0 }
 0x38f   : > { %v2240_v34 = vpack.c.bf16 %v1816_v8, %v1815_v62  ;;  %v1818_v40 = vmax.f32 %v1747_v35, 0.0 }
 0x391   : > { %2043 = vst [vmem:[%s3154_s22 + $0xe0] sm:$0xff] %v2240_v34  ;;  %v2241_v1 = vpack.c.bf16 %v1818_v40, %v1817_v59  ;;  %v1750_v37 = vpop.f32.mrb[44].mxu1 }
 0x392   : > { %v1751_v38 = vadd.f32 %v1750_v37, %v1463_v36  ;;  %v1752_v17 = vpop.f32.mrb[45].mxu1 }
 0x393   : > { %2044 = vst [vmem:[%s3154_s22 + $0xe8] sm:$0xff] %v2241_v1  ;;  %v1753_v9 = vadd.f32 %v1752_v17, %v1463_v36  ;;  %v1754_v46 = vpop.f32.mrb[46].mxu1 }
 0x394   : > { %v1819_v45 = vmax.f32 %v1751_v38, 0.0  ;;  %v1755_v43 = vadd.f32 %v1754_v46, %v1468_v41  ;;  %v1756_v63 = vpop.f32.mrb[47].mxu1 }
 0x395   : > { %v1820_v19 = vmax.f32 %v1753_v9, 0.0  ;;  %v1757_v48 = vadd.f32 %v1756_v63, %v1468_v41 }
 0x396   : > { %v1821_v39 = vmax.f32 %v1755_v43, 0.0 }
 0x397   : > { %v2242_v51 = vpack.c.bf16 %v1820_v19, %v1819_v45  ;;  %v1822_v53 = vmax.f32 %v1757_v48, 0.0 }
 0x399   : > { %2045 = vst [vmem:[%s3154_s22 + $0xf0] sm:$0xff] %v2242_v51  ;;  %v2243_v55 = vpack.c.bf16 %v1822_v53, %v1821_v39 }
 0x39b   : > { %2046 = vst [vmem:[%s3154_s22 + $0xf8] sm:$0xff] %v2243_v55 }
 0x39c   : > { %2385 = shalt.err (!%p2382_p5)
}
 0x39d   : > { %s2386_s19 = scalar_lea.hbm %s3201_s12, 4096  ;;  %s2390_s22 = scalar_lea.hbm %s3262_s7, 8192 }
 0x39e   : > { %p2387_p6 = scmp.ne.s32.totalorder %s3201_s12, %s2386_s19  ;;  %p2391_p10 = scmp.lt.u32.totalorder %s3201_s12, %s3262_s7 }
 0x39f   : > { %p2392_p11 = scmp.lt.u32.totalorder %s2390_s22, %s2386_s19  ;;  %p2394_p13 = scmp.lt.u32.totalorder %s2386_s19, %s3201_s12 }
 0x3a0   : > { %p2388_p7 = pnand %p2387_p6, %p2538_p4 }
 0x3a1   : > { %p2393_p12 = por %p2392_p11, %p2391_p10 }
 0x3a2   : > { %p2389_p9 = pneg %p2388_p7 }
 0x3a3   : > { %p2395_p0 = por %p2394_p13, %p2393_p12 }
 0x3a5   : > { %p2396_p1 = pnand %p2395_p0, %p2389_p9 }
 0x3a7   : > { %2399 = shalt.err (!%p2396_p1)
}
 0x3a8   : > { %s2456_s10 = smov 128   ;;  %s2457_s27 = smov 8  }
 0x3a9   : > { %2261 = dma.vmem_to_hbm [thread:$0]  (%p2538_p4), %s3203_s30, 4096, %s3201_s12, %s3209_s15, %s2456_s10, %s2456_s10, %s2457_s27  }
 0x3aa PF: > { %p2267_p2 = scmp.ge.s32.totalorder %s2450_s29, 2  ;;  %s2078_s16 = sand.u32 1, %s2430_s24  }
 0x3ab   : > { %s2079_s17 = scalar_lea.sflag [#allocation3], %s2078_s16 }
 0x3ac   : > { %p2264_p3 = pnand %p2267_p2, %p2545_p8 }
 0x3ae   : > { %2425 = dma.done.wait (!%p2264_p3), %s2079_s17, 4096  }
 0x3af   : > { %2427 = vsyncadd (!%p2264_p3), %s2079_s17, 4294963200  ;;  %s20_s29 = sadd.s32 1, %s2450_s29   ;;  %s3265_s24 = smov %s2434_s25 }
 0x3b0   : > { %p17_p5 = scmp.ge.s32.totalorder %s20_s29, 4   ;;  %s3266_s25 = smov %s2438_s26 }
 0x3b1   : > { %s3267_s26 = smov %s2551_s14  ;;  %s3268_s27 = smov %s2446_s28 }
 0x3b2   : > { %s3269_s28 = smov %s3271_s9  ;;  %19 = sbr.rel (!%p17_p5) target bundleno = 4 (0x4), region = 83 }
 0x3b9   :  { %2084 = vsyncpa [#allocation3], 1 }
 0x3ba   :  { %2086 = vsyncpa [#allocation3 + $0x1], 1 }

</bundles_post_ra>
